<compile_context>
chip_gen: v5e
topology: v5e:2x2
jax: 0.10.0
libtpu: 0.0.40
codegen_flags: <defaults>
</compile_context>

<pallas_src>
import math
from functools import partial

import jax
import jax.numpy as jnp
from jax.experimental import pallas as pl
from jax.experimental.pallas import tpu as pltpu


def _gelu_erf(x):
    return x * 0.5 * (1.0 + jax.lax.erf(x / math.sqrt(2.0)))


def _round_up(a, b):
    return (a + b - 1) // b * b


def _physical_vmem_bytes(default=64 << 20):
    # 128 MiB on v5e/v6e, 64 MiB per TensorCore on v7x.  Fall back to the
    # conservative 64 MiB if the query is unavailable.
    try:
        info = pltpu.get_tpu_info()
        return int(getattr(info, "vmem_capacity_bytes", default))
    except Exception:
        return default


def lm_head_kernel(x_ref, w1_ref, b1_ref, g_ref, beta_ref,
                   wdec_ref, bias_ref, o_ref, h_scratch, *, eps):
    # Grid: (token tiles i, vocab tiles j), vocab innermost.
    #
    # INVARIANT: h_scratch is written at j == 0 and reused for all later j of
    # the same token tile.  This is only correct because the vocab axis is the
    # innermost grid axis and is marked "arbitrary" (sequential).  Do not flip
    # the grid order or mark axis 1 "parallel".
    @pl.when(pl.program_id(1) == 0)
    def _():
        # dense (bf16 x bf16 -> f32 acc) + GELU + LayerNorm (f32),
        # computed once per token tile.
        h = jnp.dot(x_ref[...].astype(jnp.bfloat16), w1_ref[...],
                    preferred_element_type=jnp.float32) + b1_ref[...]
        h = _gelu_erf(h)
        mu = jnp.mean(h, axis=-1, keepdims=True)
        var = jnp.mean((h - mu) ** 2, axis=-1, keepdims=True)
        h = (h - mu) * jax.lax.rsqrt(var + eps)
        h = h * g_ref[...] + beta_ref[...]
        h_scratch[...] = h.astype(h_scratch.dtype)   # bf16 for the sweep

    # Decoder GEMM: (tm, H) @ (H, tn), bf16 x bf16 -> f32 accumulation.
    # The weight was pre-transposed at init, so this is a canonical MXU matmul
    # (no in-kernel transpose/relayout of the weight tile).
    logits = jnp.dot(h_scratch[...], wdec_ref[...],
                     preferred_element_type=jnp.float32)
    o_ref[...] = (logits + bias_ref[...]).astype(o_ref.dtype)


def prepare_lm_head_params(params, *, tn=1024):
    """One-time (init) weight preparation -- keep OUT of the per-call hot path.

    Pre-casts the GEMM weights to bf16, pre-transposes the decoder weight to
    (H, Vp), and pre-pads the vocab dim to a tile multiple so no per-call HBM
    reformat traffic remains.
    """
    Din, H = params["w1"].shape
    V = params["emb"].shape[0]
    tn = min(tn, _round_up(V, 128))
    Vp = _round_up(V, tn)

    wdec_t = params["emb"].astype(jnp.bfloat16).T          # (H, V) bf16
    bias = params["bias"].astype(jnp.float32)
    if Vp != V:
        # Padded vocab columns produce 0 logits and are sliced off after the
        # kernel.
        wdec_t = jnp.pad(wdec_t, ((0, 0), (0, Vp - V)))
        bias = jnp.pad(bias, (0, Vp - V))

    return {
        "w1": params["w1"].astype(jnp.bfloat16),             # (Din, H) bf16
        "b1": params["b1"].astype(jnp.float32).reshape(1, H),
        "gamma": params["ln_gamma"].astype(jnp.float32).reshape(1, H),
        "beta": params["ln_beta"].astype(jnp.float32).reshape(1, H),
        "wdec_t": wdec_t,                                     # (H, Vp) bf16
        "bias": bias.reshape(1, Vp),
        "vocab": V,
        "tn": tn,
    }


def bert_lm_prediction_head(x, prepared, *, tm=1024, eps=1e-12,
                            out_dtype=jnp.float32):
    """x: (batch, seq, input_size) f32 -> (batch, seq, vocab) `out_dtype`."""
    B, S, Din = x.shape
    H, Vp = prepared["wdec_t"].shape
    V = prepared["vocab"]
    tn = prepared["tn"]
    T = B * S

    # --- token tile size -------------------------------------------------
    tm = min(tm, _round_up(T, 8))
    # Megacore (v7x has 2 TensorCores): keep at least two token tiles when
    # there is enough work so the "parallel" token axis can use both cores.
    if T >= 1024:
        tm = min(tm, _round_up((T + 1) // 2, 256))

    out_itemsize = jnp.dtype(out_dtype).itemsize

    def working_set(tm_):
        # Every pipelined operand is double-buffered (incl. constant-index
        # blocks); h_scratch is single-buffered.
        # NOTE: w1/b1/gamma/beta could be single-buffered via
        # pipeline_mode=pl.Buffered(1) for a further ~Din*H*2 B of VMEM; left
        # double-buffered here and accounted for explicitly.
        return (2 * tm_ * Din * 4            # x tile (f32)
                + 2 * Din * H * 2            # dense weight (bf16)
                + 2 * 3 * H * 4              # b1, gamma, beta
                + 2 * H * tn * 2             # decoder weight tile (bf16)
                + 2 * tn * 4                 # decoder bias tile
                + 2 * tm_ * tn * out_itemsize   # output tile
                + tm_ * H * 2)               # h_scratch (bf16)

    phys_vmem = _physical_vmem_bytes()
    vmem_cap = phys_vmem * 3 // 4        # leave headroom for Mosaic scratch
    while tm > 8 and working_set(tm) + (2 << 20) > vmem_cap:
        tm = max(8, _round_up(tm // 2, 8))

    Tp = _round_up(T, tm)
    vmem_limit = min(max(int(working_set(tm) * 1.25) + (2 << 20), 32 << 20),
                     vmem_cap)

    x2 = x.reshape(T, Din)
    if Tp != T:
        # Zero-padded token rows hit LayerNorm with var=0 -> finite because
        # eps > 0; they are sliced off below.
        x2 = jnp.pad(x2, ((0, Tp - T), (0, 0)))

    grid = (Tp // tm, Vp // tn)

    out = pl.pallas_call(
        partial(lm_head_kernel, eps=eps),
        out_shape=jax.ShapeDtypeStruct((Tp, Vp), out_dtype),
        grid_spec=pltpu.PrefetchScalarGridSpec(
            num_scalar_prefetch=0,
            grid=grid,
            in_specs=[
                pl.BlockSpec((tm, Din), lambda i, j: (i, 0)),   # x tile
                pl.BlockSpec((Din, H), lambda i, j: (0, 0)),    # dense W (bf16)
                pl.BlockSpec((1, H), lambda i, j: (0, 0)),      # dense bias
                pl.BlockSpec((1, H), lambda i, j: (0, 0)),      # LN gamma
                pl.BlockSpec((1, H), lambda i, j: (0, 0)),      # LN beta
                pl.BlockSpec((H, tn), lambda i, j: (0, j)),     # emb^T tile
                pl.BlockSpec((1, tn), lambda i, j: (0, j)),     # decoder bias
            ],
            out_specs=pl.BlockSpec((tm, tn), lambda i, j: (i, j)),
            scratch_shapes=[pltpu.VMEM((tm, H), jnp.bfloat16)],
        ),
        compiler_params=pltpu.CompilerParams(
            # Token axis parallel (megacore sharding on v7x); vocab axis must
            # stay arbitrary/innermost for the h_scratch reuse to be valid.
            dimension_semantics=("parallel", "arbitrary"),
            vmem_limit_bytes=int(vmem_limit)),
    )(x2, prepared["w1"], prepared["b1"], prepared["gamma"],
      prepared["beta"], prepared["wdec_t"], prepared["bias"])

    return out[:T, :V].reshape(B, S, V)


def make_params(key, input_size, hidden_size, vocab_size):
    k1, k2 = jax.random.split(key, 2)
    return {
        # dense: Linear(input_size, hidden_size); stored as (Din, H) = weight.T
        "w1": (jax.random.normal(k1, (input_size, hidden_size), jnp.float32)
               * 0.02),
        "b1": jnp.zeros((hidden_size,), jnp.float32),
        # BertLayerNorm init: weight=1, bias=0
        "ln_gamma": jnp.ones((hidden_size,), jnp.float32),
        "ln_beta": jnp.zeros((hidden_size,), jnp.float32),
        # tied embedding weights: (vocab, hidden)
        "emb": (jax.random.normal(k2, (vocab_size, hidden_size), jnp.float32)
                * 0.02),
        # decoder output bias (init zeros in the module)
        "bias": jnp.zeros((vocab_size,), jnp.float32),
    }


def reference(x, params, eps=1e-12):
    h = jnp.einsum("bsd,dh->bsh", x, params["w1"]) + params["b1"]
    h = _gelu_erf(h)
    mu = jnp.mean(h, axis=-1, keepdims=True)
    var = jnp.mean((h - mu) ** 2, axis=-1, keepdims=True)
    h = (h - mu) / jnp.sqrt(var + eps)
    h = h * params["ln_gamma"] + params["ln_beta"]
    return jnp.einsum("bsh,vh->bsv", h, params["emb"]) + params["bias"]


if __name__ == "__main__":
    # Small, TPU-tile-friendly shapes (hidden=128 stands in for BERT's 768).
    batch, seq = 2, 64
    input_size, hidden_size, vocab_size = 128, 128, 512

    key = jax.random.PRNGKey(0)
    kx, kp = jax.random.split(key)
    x = jax.random.normal(kx, (batch, seq, input_size), jnp.float32)
    params = make_params(kp, input_size, hidden_size, vocab_size)

    # One-time weight prep (bf16 cast, transpose, pad) -- out of the hot path.
    prepared = prepare_lm_head_params(params)

    out = bert_lm_prediction_head(x, prepared)
    out = jax.block_until_ready(out)

    ref = reference(x, params)
    assert out.shape == (batch, seq, vocab_size)
    # Both GEMMs run with bf16 inputs (f32 accumulation), so compare with a
    # bf16-appropriate tolerance.
    assert jnp.allclose(out, ref, atol=3e-2, rtol=3e-2), (
        float(jnp.max(jnp.abs(out - ref))))

    print("KERNEL_OK")
</pallas_src>

<mosaic_0001>
module attributes {stable_mosaic.version = 11 : i64} {
  func.func @lm_head_kernel(%arg0: i32, %arg1: i32, %arg2: memref<128x128xf32, #tpu.memory_space<vmem>>, %arg3: memref<128x128xbf16, #tpu.memory_space<vmem>>, %arg4: memref<1x128xf32, #tpu.memory_space<vmem>>, %arg5: memref<1x128xf32, #tpu.memory_space<vmem>>, %arg6: memref<1x128xf32, #tpu.memory_space<vmem>>, %arg7: memref<128x512xbf16, #tpu.memory_space<vmem>>, %arg8: memref<1x512xf32, #tpu.memory_space<vmem>>, %arg9: memref<128x512xf32, #tpu.memory_space<vmem>>, %arg10: memref<128x128xbf16, #tpu.memory_space<vmem>>) attributes {dimension_semantics = [#tpu.dimension_semantics<parallel>, #tpu.dimension_semantics<arbitrary>], iteration_bounds = array<i64: 1, 1>, scalar_prefetch = 0 : i64, scratch_operands = 1 : i64, tpu.core_type = #tpu.core_type<tc>, window_params = [{transform_indices = @transform_0, window_bounds = array<i64: 128, 128>}, {pipeline_mode = #tpu.pipeline_mode<synchronous>, transform_indices = @transform_1, window_bounds = array<i64: 128, 128>}, {pipeline_mode = #tpu.pipeline_mode<synchronous>, transform_indices = @transform_2, window_bounds = array<i64: 1, 128>}, {pipeline_mode = #tpu.pipeline_mode<synchronous>, transform_indices = @transform_3, window_bounds = array<i64: 1, 128>}, {pipeline_mode = #tpu.pipeline_mode<synchronous>, transform_indices = @transform_4, window_bounds = array<i64: 1, 128>}, {transform_indices = @transform_5, window_bounds = array<i64: 128, 512>}, {transform_indices = @transform_6, window_bounds = array<i64: 1, 512>}, {transform_indices = @transform_7, window_bounds = array<i64: 128, 512>}]} {
    %c0_i32 = arith.constant 0 : i32
    %0 = arith.cmpi eq, %arg1, %c0_i32 : i32
    %1 = arith.extui %0 : i1 to i32
    %c0_i32_0 = arith.constant 0 : i32
    %2 = arith.cmpi ne, %1, %c0_i32_0 : i32
    scf.if %2 {
      %c0_8 = arith.constant 0 : index
      %c0_9 = arith.constant 0 : index
      %10 = vector.load %arg2[%c0_8, %c0_9] : memref<128x128xf32, #tpu.memory_space<vmem>>, vector<128x128xf32>
      %11 = arith.truncf %10 : vector<128x128xf32> to vector<128x128xbf16>
      %c0_10 = arith.constant 0 : index
      %c0_11 = arith.constant 0 : index
      %12 = vector.load %arg3[%c0_10, %c0_11] : memref<128x128xbf16, #tpu.memory_space<vmem>>, vector<128x128xbf16>
      %cst_12 = arith.constant dense<0.000000e+00> : vector<128x128xf32>
      %13 = tpu.matmul %11, %12, %cst_12 {dimension_numbers = #tpu.dot_dimension_numbers<[1], [0], [0], [1], [0, 0, 1, 1], [], []>} : vector<128x128xbf16>, vector<128x128xbf16>, vector<128x128xf32> -> vector<128x128xf32>
      %c0_13 = arith.constant 0 : index
      %c0_14 = arith.constant 0 : index
      %14 = vector.load %arg4[%c0_13, %c0_14] : memref<1x128xf32, #tpu.memory_space<vmem>>, vector<1x128xf32>
      %15 = vector.broadcast %14 : vector<1x128xf32> to vector<128x128xf32>
      %16 = arith.addf %13, %15 : vector<128x128xf32>
      %cst_15 = arith.constant 5.000000e-01 : f32
      %17 = vector.broadcast %cst_15 : f32 to vector<128x128xf32>
      %18 = arith.mulf %16, %17 : vector<128x128xf32>
      %cst_16 = arith.constant 1.41421354 : f32
      %19 = vector.broadcast %cst_16 : f32 to vector<128x128xf32>
      %20 = arith.divf %16, %19 : vector<128x128xf32>
      %21 = math.erf %20 : vector<128x128xf32>
      %cst_17 = arith.constant 1.000000e+00 : f32
      %22 = vector.broadcast %cst_17 : f32 to vector<128x128xf32>
      %23 = arith.addf %22, %21 : vector<128x128xf32>
      %24 = arith.mulf %18, %23 : vector<128x128xf32>
      %cst_18 = arith.constant dense<0.000000e+00> : vector<128xf32>
      %25 = vector.multi_reduction <add>, %24, %cst_18 [1] : vector<128x128xf32> to vector<128xf32>
      %26 = vector.shape_cast %25 : vector<128xf32> to vector<128x1xf32>
      %cst_19 = arith.constant 1.280000e+02 : f32
      %27 = vector.broadcast %cst_19 : f32 to vector<128x1xf32>
      %28 = arith.divf %26, %27 : vector<128x1xf32>
      %29 = vector.broadcast %28 : vector<128x1xf32> to vector<128x128xf32>
      %30 = arith.subf %24, %29 : vector<128x128xf32>
      %31 = arith.mulf %30, %30 : vector<128x128xf32>
      %cst_20 = arith.constant dense<0.000000e+00> : vector<128xf32>
      %32 = vector.multi_reduction <add>, %31, %cst_20 [1] : vector<128x128xf32> to vector<128xf32>
      %33 = vector.shape_cast %32 : vector<128xf32> to vector<128x1xf32>
      %cst_21 = arith.constant 1.280000e+02 : f32
      %34 = vector.broadcast %cst_21 : f32 to vector<128x1xf32>
      %35 = arith.divf %33, %34 : vector<128x1xf32>
      %36 = vector.broadcast %28 : vector<128x1xf32> to vector<128x128xf32>
      %37 = arith.subf %24, %36 : vector<128x128xf32>
      %cst_22 = arith.constant 9.99999996E-13 : f32
      %38 = vector.broadcast %cst_22 : f32 to vector<128x1xf32>
      %39 = arith.addf %35, %38 : vector<128x1xf32>
      %40 = math.rsqrt %39 : vector<128x1xf32>
      %41 = vector.broadcast %40 : vector<128x1xf32> to vector<128x128xf32>
      %42 = arith.mulf %37, %41 : vector<128x128xf32>
      %c0_23 = arith.constant 0 : index
      %c0_24 = arith.constant 0 : index
      %43 = vector.load %arg5[%c0_23, %c0_24] : memref<1x128xf32, #tpu.memory_space<vmem>>, vector<1x128xf32>
      %44 = vector.broadcast %43 : vector<1x128xf32> to vector<128x128xf32>
      %45 = arith.mulf %42, %44 : vector<128x128xf32>
      %c0_25 = arith.constant 0 : index
      %c0_26 = arith.constant 0 : index
      %46 = vector.load %arg6[%c0_25, %c0_26] : memref<1x128xf32, #tpu.memory_space<vmem>>, vector<1x128xf32>
      %47 = vector.broadcast %46 : vector<1x128xf32> to vector<128x128xf32>
      %48 = arith.addf %45, %47 : vector<128x128xf32>
      %49 = arith.truncf %48 : vector<128x128xf32> to vector<128x128xbf16>
      %c0_27 = arith.constant 0 : index
      %c0_28 = arith.constant 0 : index
      %50 = vector.load %arg10[%c0_27, %c0_28] : memref<128x128xbf16, #tpu.memory_space<vmem>>, vector<128x128xbf16>
      tpu.vector_store %arg10[%c0_27, %c0_28], %49 {strides = array<i32>} : memref<128x128xbf16, #tpu.memory_space<vmem>>, vector<128x128xbf16>,
    } else {
    }
    %c0 = arith.constant 0 : index
    %c0_1 = arith.constant 0 : index
    %3 = vector.load %arg10[%c0, %c0_1] : memref<128x128xbf16, #tpu.memory_space<vmem>>, vector<128x128xbf16>
    %c0_2 = arith.constant 0 : index
    %c0_3 = arith.constant 0 : index
    %4 = vector.load %arg7[%c0_2, %c0_3] : memref<128x512xbf16, #tpu.memory_space<vmem>>, vector<128x512xbf16>
    %cst = arith.constant dense<0.000000e+00> : vector<128x512xf32>
    %5 = tpu.matmul %3, %4, %cst {dimension_numbers = #tpu.dot_dimension_numbers<[1], [0], [0], [1], [0, 0, 1, 1], [], []>} : vector<128x128xbf16>, vector<128x512xbf16>, vector<128x512xf32> -> vector<128x512xf32>
    %c0_4 = arith.constant 0 : index
    %c0_5 = arith.constant 0 : index
    %6 = vector.load %arg8[%c0_4, %c0_5] : memref<1x512xf32, #tpu.memory_space<vmem>>, vector<1x512xf32>
    %7 = vector.broadcast %6 : vector<1x512xf32> to vector<128x512xf32>
    %8 = arith.addf %5, %7 : vector<128x512xf32>
    %c0_6 = arith.constant 0 : index
    %c0_7 = arith.constant 0 : index
    %9 = vector.load %arg9[%c0_6, %c0_7] : memref<128x512xf32, #tpu.memory_space<vmem>>, vector<128x512xf32>
    tpu.vector_store %arg9[%c0_6, %c0_7], %8 {strides = array<i32>} : memref<128x512xf32, #tpu.memory_space<vmem>>, vector<128x512xf32>,
    return
  }
  func.func @transform_0(%arg0: i32, %arg1: i32) -> (i32, i32) {
    %c0_i32 = arith.constant 0 : i32
    %c0_i32_0 = arith.constant 0 : i32
    return %arg0, %c0_i32 : i32, i32
  }
  func.func @transform_1(%arg0: i32, %arg1: i32) -> (i32, i32) {
    %c0_i32 = arith.constant 0 : i32
    %c0_i32_0 = arith.constant 0 : i32
    %c0_i32_1 = arith.constant 0 : i32
    return %c0_i32, %c0_i32_0 : i32, i32
  }
  func.func @transform_2(%arg0: i32, %arg1: i32) -> (i32, i32) {
    %c0_i32 = arith.constant 0 : i32
    %c0_i32_0 = arith.constant 0 : i32
    %c0_i32_1 = arith.constant 0 : i32
    return %c0_i32, %c0_i32_0 : i32, i32
  }
  func.func @transform_3(%arg0: i32, %arg1: i32) -> (i32, i32) {
    %c0_i32 = arith.constant 0 : i32
    %c0_i32_0 = arith.constant 0 : i32
    %c0_i32_1 = arith.constant 0 : i32
    return %c0_i32, %c0_i32_0 : i32, i32
  }
  func.func @transform_4(%arg0: i32, %arg1: i32) -> (i32, i32) {
    %c0_i32 = arith.constant 0 : i32
    %c0_i32_0 = arith.constant 0 : i32
    %c0_i32_1 = arith.constant 0 : i32
    return %c0_i32, %c0_i32_0 : i32, i32
  }
  func.func @transform_5(%arg0: i32, %arg1: i32) -> (i32, i32) {
    %c0_i32 = arith.constant 0 : i32
    %c0_i32_0 = arith.constant 0 : i32
    return %c0_i32, %arg1 : i32, i32
  }
  func.func @transform_6(%arg0: i32, %arg1: i32) -> (i32, i32) {
    %c0_i32 = arith.constant 0 : i32
    %c0_i32_0 = arith.constant 0 : i32
    return %c0_i32, %arg1 : i32, i32
  }
  func.func @transform_7(%arg0: i32, %arg1: i32) -> (i32, i32) {
    %c0_i32 = arith.constant 0 : i32
    return %arg0, %arg1 : i32, i32
  }
}

</mosaic_0001>

<bundles_post_ra>
// kernel: tpu_custom_call.1
= control target key start
LH: loop header
LB: loop body
LE: loop exit
PB: predicated region body
PF: predicated region fallthrough
CT: control target
= control target key end

     0   :  { %12 = vsyncpa [#allocation4], 0  ;;  %s3584_s0 = inlined_call_operand.hbm [shape: f32[128,128], index: 0, kind: input, shape index: {}]   ;;  %s3585_s1 = inlined_call_operand.hbm [shape: bf16[128,128], index: 1, kind: input, shape index: {}]   ;;  %s3586_s2 = inlined_call_operand.vmem [shape: f32[1,128], index: 2, kind: input, shape index: {}]   ;;  %s3587_s3 = inlined_call_operand.hbm [shape: f32[1,128], index: 3, kind: input, shape index: {}]   ;;  %s3588_s4 = inlined_call_operand.hbm [shape: f32[1,128], index: 4, kind: input, shape index: {}]   ;;  %s3589_s5 = inlined_call_operand.hbm [shape: bf16[128,512], index: 5, kind: input, shape index: {}]   ;;  %s3590_s6 = inlined_call_operand.vmem [shape: f32[1,512], index: 6, kind: input, shape index: {}]   ;;  %s3591_s7 = inlined_call_operand.hbm [shape: f32[128,512], index: 7, kind: output, shape index: {}]  }
   0x1   :  { %13 = vsyncpa [#allocation7], 0 }
   0x2   :  { %14 = vsyncpa [#allocation10], 0  ;;  %s33_s26 = sshll.u32 %s3585_s1, 4  ;;  %s34_s26 = int_to_ptr.hbm [resolvable:$true] %s33_s26 }
   0x3   :  { %15 = vsyncpa [#allocation5], 0  ;;  %s2470_s27 = smov [#allocation6]   ;;  %s60_s8 = sshll.u32 %s3588_s4, 4  ;;  %s61_s8 = int_to_ptr.hbm [resolvable:$true] %s60_s8 }
   0x4   :  { %s35_s28 = sshll.u32 %s2470_s27, 4  ;;  %s2471_s9 = smov 64   ;;  %s36_s28 = int_to_ptr.vmem [resolvable:$true] %s35_s28 }
   0x5   :  { %s2472_s10 = smov 4   ;;  %s2473_s11 = smov [#allocation9]  }
   0x6   :  { %41 = dma.hbm_to_vmem [thread:$0]  %s34_s26, 1024, %s36_s28, [#allocation7], %s2471_s9, %s2471_s9, %s2472_s10  }
   0x7   :  { %s62_s12 = sshll.u32 %s2473_s11, 4  ;;  %s20_s15 = sshll.u32 %s3584_s0, 4  ;;  %s63_s12 = int_to_ptr.vmem [resolvable:$true] %s62_s12  ;;  %s21_s15 = int_to_ptr.hbm [resolvable:$true] %s20_s15 }
   0x8   :  { %65 = dma.hbm_to_vmem [thread:$0]  %s61_s8, 16, %s63_s12, [#allocation10]  }
   0x9   :  { %s2474_s1 = smov [#allocation3]   ;;  %s49_s4 = sshll.u32 %s3587_s3, 4  ;;  %s50_s4 = int_to_ptr.hbm [resolvable:$true] %s49_s4 }
   0xa   :  { %s22_s16 = sshll.u32 %s2474_s1, 4  ;;  %s2475_s19 = smov 128   ;;  %s23_s16 = int_to_ptr.vmem [resolvable:$true] %s22_s16 }
   0xb   :  { %s2476_s20 = smov 8   ;;  %s2477_s21 = smov [#allocation8]  }
   0xc   :  { %28 = dma.hbm_to_vmem [thread:$0]  %s21_s15, 2048, %s23_s16, [#allocation4], %s2475_s19, %s2475_s19, %s2476_s20  }
   0xd   :  { %s51_s22 = sshll.u32 %s2477_s21, 4  ;;  %s70_s0 = sshll.u32 %s3589_s5, 4  ;;  %s52_s22 = int_to_ptr.vmem [resolvable:$true] %s51_s22  ;;  %s71_s0 = int_to_ptr.hbm [resolvable:$true] %s70_s0 }
   0xe   :  { %54 = dma.hbm_to_vmem [thread:$0]  %s50_s4, 16, %s52_s22, [#allocation7]  }
   0xf   :  { %s2478_s25 = smov [#allocation11]   ;;  %s2479_s27 = smov 256  }
  0x10   :  { %s72_s26 = sshll.u32 %s2478_s25, 4  ;;  %s2480_s28 = smov 16   ;;  %s73_s26 = int_to_ptr.vmem [resolvable:$true] %s72_s26 }
  0x11   :  { %78 = dma.hbm_to_vmem [thread:$0]  %s71_s0, 4096, %s73_s26, [#allocation10], %s2479_s27, %s2479_s27, %s2480_s28  }
  0x12   :  { %2462 = dma.done.wait [#allocation4], 2048  }
  0x13   :  { %2463 = vsyncadd [#allocation4], 4294965248 }
  0x14   :  { %2464 = dma.done.wait [#allocation7], 1040  }
  0x15   :  { %2465 = vsyncadd [#allocation7], 4294966256 }
  0x16   :  { %2466 = dma.done.wait [#allocation10], 4112  }
  0x17   :  { %2467 = vsyncadd [#allocation10], 4294963184  ;;  %v2118_v0 = vld [vmem:[#allocation6 + $0x38] sm:$0xff]  ;;  %v2117_v1 = vld [vmem:[#allocation6 + $0x30] sm:$0xff]  ;;  %v2481_v23 = vmov 1.4142135  }
  0x18   :  { %197 = vmatpush.bf16.msra.mxu0 %v2118_v0  ;;  %2206 = vmatpush.bf16.msra.mxu1 %v2118_v0  ;;  %v2116_v2 = vld [vmem:[#allocation6 + $0x28] sm:$0xff]  ;;  %v2115_v3 = vld [vmem:[#allocation6 + $0x20] sm:$0xff]  ;;  %v2114_v4 = vld [vmem:[#allocation6 + $0x18] sm:$0xff]  ;;  %2249 = vrcp.f32 %v2481_v23  ;;  %s1888_s12 = sshll.u32 %s3591_s7, 4  ;;  %s2484_s13 = smov 512   ;;  %s1889_s12 = int_to_ptr.hbm [resolvable:$true] %s1888_s12 }
  0x19   :  { %2207 = vmatpush.bf16.msra.mxu2 %v2118_v0  ;;  %2208 = vmatpush.bf16.msra.mxu3 %v2118_v0  ;;  %v2113_v5 = vld [vmem:[#allocation6 + $0x10] sm:$0xff]  ;;  %v2112_v6 = vld [vmem:[#allocation6 + $0x8] sm:$0xff]  ;;  %v2111_v7 = vld [vmem:[#allocation6] sm:$0xff]  ;;  %s2485_s14 = smov 32  }
  0x1a   :  { %v105_v8 = vld [vmem:[#allocation3] sm:$0xff]  ;;  %v106_v9 = vld [vmem:[#allocation3 + $0x8] sm:$0xff]  ;;  %v107_v17 = vld [vmem:[#allocation3 + $0x10] sm:$0xff] }
  0x1b   :  { %v109_v10 = vld [vmem:[#allocation3 + $0x20] sm:$0xff]  ;;  %v110_v11 = vld [vmem:[#allocation3 + $0x28] sm:$0xff]  ;;  %v121_v14 = vpack.c.bf16 %v106_v9, %v105_v8  ;;  %v108_v18 = vld [vmem:[#allocation3 + $0x18] sm:$0xff] }
  0x1c   :  { %198 = vmatpush.bf16.msra.mxu0 %v2117_v1  ;;  %2209 = vmatpush.bf16.msra.mxu1 %v2117_v1  ;;  %v113_v12 = vld [vmem:[#allocation3 + $0x40] sm:$0xff]  ;;  %v114_v13 = vld [vmem:[#allocation3 + $0x48] sm:$0xff]  ;;  %v123_v15 = vpack.c.bf16 %v110_v11, %v109_v10  ;;  %v111_v19 = vld [vmem:[#allocation3 + $0x30] sm:$0xff]  ;;  %v122_v21 = vpack.c.bf16 %v108_v18, %v107_v17 }
  0x1d   :  { %2210 = vmatpush.bf16.msra.mxu2 %v2117_v1  ;;  %2211 = vmatpush.bf16.msra.mxu3 %v2117_v1  ;;  %v125_v16 = vpack.c.bf16 %v114_v13, %v113_v12  ;;  %v112_v20 = vld [vmem:[#allocation3 + $0x38] sm:$0xff]  ;;  %v115_v27 = vld [vmem:[#allocation3 + $0x50] sm:$0xff]  ;;  %v117_v29 = vld [vmem:[#allocation3 + $0x60] sm:$0xff] }
  0x1e   :  { %v124_v22 = vpack.c.bf16 %v112_v20, %v111_v19  ;;  %v2250_v24 = vpop.eup %2249  ;;  %v116_v28 = vld [vmem:[#allocation3 + $0x58] sm:$0xff]  ;;  %v118_v31 = vld [vmem:[#allocation3 + $0x68] sm:$0xff]  ;;  %v2544_v35 = vld [vmem:[%s3586_s2] ss:$0 sm:$0xff] }
  0x1f   :  { %v263_v25 = vmul.f32 1.4142135, %v2250_v24  ;;  %v126_v30 = vpack.c.bf16 %v116_v28, %v115_v27  ;;  %v127_v32 = vpack.c.bf16 %v118_v31, %v117_v29  ;;  %vm267_vm0 = vweird.f32 %v2250_v24  ;;  %v119_v45 = vld [vmem:[#allocation3 + $0x70] sm:$0xff]  ;;  %v120_v46 = vld [vmem:[#allocation3 + $0x78] sm:$0xff] }
  0x20   :  { %199 = vmatpush.bf16.msra.mxu0 %v2116_v2  ;;  %2212 = vmatpush.bf16.msra.mxu1 %v2116_v2  ;;  %v128_v49 = vpack.c.bf16 %v120_v46, %v119_v45 }
  0x21   :  { %2213 = vmatpush.bf16.msra.mxu2 %v2116_v2  ;;  %2214 = vmatpush.bf16.msra.mxu3 %v2116_v2  ;;  %v264_v26 = vsub.f32 1.0, %v263_v25 }
  0x23   :  { %v265_v33 = vmul.f32 %v2250_v24, %v264_v26 }
  0x24   :  { %200 = vmatpush.bf16.msra.mxu0 %v2115_v3  ;;  %2215 = vmatpush.bf16.msra.mxu1 %v2115_v3 }
  0x25   :  { %2216 = vmatpush.bf16.msra.mxu2 %v2115_v3  ;;  %2217 = vmatpush.bf16.msra.mxu3 %v2115_v3  ;;  %v266_v34 = vadd.f32 %v2250_v24, %v265_v33 }
  0x27   :  { %v2546_v37 = vsel %vm267_vm0, %v2250_v24, %v266_v34 }
  0x28   :  { %201 = vmatpush.bf16.msra.mxu0 %v2114_v4  ;;  %2218 = vmatpush.bf16.msra.mxu1 %v2114_v4 }
  0x29   :  { %2219 = vmatpush.bf16.msra.mxu2 %v2114_v4  ;;  %2220 = vmatpush.bf16.msra.mxu3 %v2114_v4 }
  0x2c   :  { %202 = vmatpush.bf16.msra.mxu0 %v2113_v5  ;;  %2221 = vmatpush.bf16.msra.mxu1 %v2113_v5 }
  0x2d   :  { %2222 = vmatpush.bf16.msra.mxu2 %v2113_v5  ;;  %2223 = vmatpush.bf16.msra.mxu3 %v2113_v5 }
  0x30   :  { %203 = vmatpush.bf16.msra.mxu0 %v2112_v6  ;;  %2224 = vmatpush.bf16.msra.mxu1 %v2112_v6 }
  0x31   :  { %2225 = vmatpush.bf16.msra.mxu2 %v2112_v6  ;;  %2226 = vmatpush.bf16.msra.mxu3 %v2112_v6 }
  0x34   :  { %204 = vmatpush.bf16.msra.mxu0 %v2111_v7  ;;  %2227 = vmatpush.bf16.msra.mxu1 %v2111_v7 }
  0x35   :  { %2228 = vmatpush.bf16.msra.mxu2 %v2111_v7  ;;  %2229 = vmatpush.bf16.msra.mxu3 %v2111_v7 }
  0x37   :  { %205 = vmatmul.bf16.vlgmr.msra.gmra.mxu0 %v121_v14  ;;  %215 = vmatmul.bf16.vlgmr.msra.gmra.mxu1 %v123_v15 }
  0x38   :  { %225 = vmatmul.bf16.vlgmr.msra.gmra.mxu2 %v125_v16  ;;  %235 = vmatmul.bf16.vlgmr.msra.gmra.mxu3 %v127_v32 }
  0x47   :  { %210 = vmatmul.bf16.gmra.mxu0 %v122_v21  ;;  %220 = vmatmul.bf16.gmra.mxu1 %v124_v22 }
  0x48   :  { %230 = vmatmul.bf16.gmra.mxu2 %v126_v30  ;;  %240 = vmatmul.bf16.gmra.mxu3 %v128_v49 }
  0xb4   :  { %v206_v36 = vpop.f32.mrf.mxu0  ;;  %v216_v38 = vpop.f32.mrf.mxu1 }
  0xb5   :  { %v2549_v39 = vadd.f32 %v2544_v35, %v206_v36  ;;  %v2552_v40 = vadd.f32 %v2544_v35, %v216_v38 }
  0xb7   :  { %v2556_v41 = vmul.f32 %v2546_v37, %v2549_v39  ;;  %v2560_v42 = vmul.f32 %v2546_v37, %v2552_v40 }
  0xb9   :  { %v285_v43 = vmul.f32 %v2556_v41, %v2556_v41  ;;  %v445_v44 = vmul.f32 %v2560_v42, %v2560_v42 }
  0xbb   :  { %v2566_v47 = vmin.f32 %v285_v43, 16.0  ;;  %v2568_v48 = vmin.f32 %v445_v44, 16.0 }
  0xbc   :  { %v208_v50 = vpop.f32.mrf.mxu0  ;;  %v218_v51 = vpop.f32.mrf.mxu1 }
  0xbd   :  { %v287_v52 = vmul.f32 2.1237322e-06, %v2566_v47  ;;  %v447_v53 = vmul.f32 2.1237322e-06, %v2568_v48  ;;  %v2573_v54 = vadd.f32 %v2544_v35, %v208_v50  ;;  %v2576_v55 = vadd.f32 %v2544_v35, %v218_v51 }
  0xbe   :  { %v458_v56 = vmul.f32 3.8918573e-05, %v2568_v48  ;;  %v298_v57 = vmul.f32 3.8918573e-05, %v2566_v47 }
  0xbf   :  { %v288_v58 = vadd.f32 0.00028619796, %v287_v52  ;;  %v448_v59 = vadd.f32 0.00028619796, %v447_v53  ;;  %v2582_v60 = vmul.f32 %v2546_v37, %v2573_v54  ;;  %v2586_v61 = vmul.f32 %v2546_v37, %v2576_v55 }
  0xc0   :  { %v459_v62 = vadd.f32 0.001143296, %v458_v56  ;;  %v299_v63 = vadd.f32 0.001143296, %v298_v57 }
  0xc1   :  { %v289_v0 = vmul.f32 %v288_v58, %v2566_v47  ;;  %v449_v1 = vmul.f32 %v448_v59, %v2568_v48  ;;  %v325_v2 = vmul.f32 %v2582_v60, %v2582_v60  ;;  %v485_v3 = vmul.f32 %v2586_v61, %v2586_v61 }
  0xc2   :  { %v460_v4 = vmul.f32 %v459_v62, %v2568_v48  ;;  %v300_v12 = vmul.f32 %v299_v63, %v2566_v47 }
  0xc3   :  { %v290_v5 = vadd.f32 0.0036580483, %v289_v0  ;;  %v450_v6 = vadd.f32 0.0036580483, %v449_v1  ;;  %v2595_v7 = vmin.f32 %v325_v2, 16.0  ;;  %v2597_v8 = vmin.f32 %v485_v3, 16.0 }
  0xc4   :  { %v211_v9 = vpop.f32.mrf.mxu0  ;;  %v221_v10 = vpop.f32.mrf.mxu1  ;;  %v461_v11 = vadd.f32 0.014752088, %v460_v4  ;;  %v301_v24 = vadd.f32 0.014752088, %v300_v12 }
  0xc5   :  { %v291_v13 = vmul.f32 %v290_v5, %v2566_v47  ;;  %v451_v14 = vmul.f32 %v450_v6, %v2568_v48  ;;  %v327_v15 = vmul.f32 2.1237322e-06, %v2595_v7  ;;  %v2604_v16 = vadd.f32 %v2544_v35, %v211_v9 }
  0xc6   :  { %v487_v17 = vmul.f32 2.1237322e-06, %v2597_v8  ;;  %v2608_v18 = vadd.f32 %v2544_v35, %v221_v10  ;;  %v462_v19 = vmul.f32 %v461_v11, %v2568_v48  ;;  %v302_v46 = vmul.f32 %v301_v24, %v2566_v47 }
  0xc7   :  { %v328_v20 = vadd.f32 0.00028619796, %v327_v15  ;;  %v2613_v21 = vmul.f32 %v2546_v37, %v2604_v16  ;;  %v292_v25 = vadd.f32 0.05243302, %v291_v13  ;;  %v452_v26 = vadd.f32 0.05243302, %v451_v14 }
  0xc8   :  { %v488_v22 = vadd.f32 0.00028619796, %v487_v17  ;;  %v2617_v23 = vmul.f32 %v2546_v37, %v2608_v18  ;;  %v463_v30 = vadd.f32 0.112945676, %v462_v19  ;;  %v303_v2 = vadd.f32 0.112945676, %v302_v46 }
  0xc9   :  { %v329_v27 = vmul.f32 %v328_v20, %v2595_v7  ;;  %v365_v28 = vmul.f32 %v2613_v21, %v2613_v21  ;;  %v293_v43 = vmul.f32 %v292_v25, %v2566_v47  ;;  %v453_v44 = vmul.f32 %v452_v26, %v2568_v48 }
  0xca   :  { %v525_v29 = vmul.f32 %v2617_v23, %v2617_v23  ;;  %v489_v32 = vmul.f32 %v488_v22, %v2597_v8  ;;  %v464_v38 = vmul.f32 %v463_v30, %v2568_v48  ;;  %v304_v13 = vmul.f32 %v303_v2, %v2566_v47 }
  0xcb   :  { %v330_v31 = vadd.f32 0.0036580483, %v329_v27  ;;  %v2625_v33 = vmin.f32 %v365_v28, 16.0  ;;  %v294_v62 = vadd.f32 0.18741608, %v293_v43 }
  0xcc   :  { %v2627_v34 = vmin.f32 %v525_v29, 16.0  ;;  %v213_v36 = vpop.f32.mrf.mxu0  ;;  %v465_v52 = vadd.f32 0.4994258, %v464_v38  ;;  %v490_v53 = vadd.f32 0.0036580483, %v489_v32 }
  0xcd   :  { %v2633_v45 = vadd.f32 %v2544_v35, %v213_v36  ;;  %v331_v49 = vmul.f32 %v330_v31, %v2595_v7  ;;  %v367_v50 = vmul.f32 2.1237322e-06, %v2625_v33  ;;  %v454_v63 = vadd.f32 0.18741608, %v453_v44 }
  0xce   :  { %v527_v51 = vmul.f32 2.1237322e-06, %v2627_v34  ;;  %v466_v59 = vmul.f32 %v465_v52, %v2568_v48  ;;  %v491_v3 = vmul.f32 %v490_v53, %v2597_v8  ;;  %v295_v9 = vmul.f32 %v294_v62, %v2566_v47 }
  0xcf   :  { %v368_v56 = vadd.f32 0.00028619796, %v367_v50  ;;  %v2641_v58 = vmul.f32 %v2546_v37, %v2633_v45  ;;  %v332_v0 = vadd.f32 0.05243302, %v331_v49  ;;  %v455_v10 = vmul.f32 %v454_v63, %v2568_v48 }
  0xd0   :  { %v528_v57 = vadd.f32 0.00028619796, %v527_v51  ;;  %v467_v4 = vadd.f32 1.0, %v466_v59  ;;  %v492_v14 = vadd.f32 0.05243302, %v491_v3  ;;  %v250_v62 = vmul.f32 0.5, %v2552_v40 }
  0xd1   :  { %v369_v5 = vmul.f32 %v368_v56, %v2625_v33  ;;  %v405_v6 = vmul.f32 %v2641_v58, %v2641_v58  ;;  %v333_v11 = vmul.f32 %v332_v0, %v2595_v7  ;;  %v498_v15 = vmul.f32 3.8918573e-05, %v2597_v8 }
  0xd2   :  { %v529_v1 = vmul.f32 %v528_v57, %v2627_v34  ;;  %2251 = vrcp.f32 %v467_v4  ;;  %v296_v20 = vadd.f32 1.1283791, %v295_v9  ;;  %v456_v22 = vadd.f32 1.1283791, %v455_v10 }
  0xd3   :  { %v370_v17 = vadd.f32 0.0036580483, %v369_v5  ;;  %v2654_v19 = vmin.f32 %v405_v6, 16.0  ;;  %v334_v24 = vadd.f32 0.18741608, %v333_v11  ;;  %v493_v28 = vmul.f32 %v492_v14, %v2597_v8 }
  0xd4   :  { %v530_v12 = vadd.f32 0.0036580483, %v529_v1  ;;  %v305_v48 = vadd.f32 0.4994258, %v304_v13  ;;  %v499_v29 = vadd.f32 0.001143296, %v498_v15  ;;  %vm473_vm1 = vweird.f32 %v467_v4 }
  0xd5   :  { %v407_v26 = vmul.f32 2.1237322e-06, %v2654_v19  ;;  %v338_v30 = vmul.f32 3.8918573e-05, %v2595_v7  ;;  %v538_v31 = vmul.f32 3.8918573e-05, %v2627_v34  ;;  %v371_v32 = vmul.f32 %v370_v17, %v2625_v33 }
  0xd6   :  { %v531_v25 = vmul.f32 %v530_v12, %v2627_v34  ;;  %v477_v38 = vand.u32 2147483647, %v467_v4  ;;  %v479_v43 = vand.u32 2147483648, %v467_v4  ;;  %v306_v44 = vmul.f32 %v305_v48, %v2566_v47 }
  0xd7   :  { %v500_v46 = vmul.f32 %v499_v29, %v2597_v8  ;;  %v339_v49 = vadd.f32 0.001143296, %v338_v30  ;;  %v539_v52 = vadd.f32 0.001143296, %v538_v31  ;;  %v408_v53 = vadd.f32 0.00028619796, %v407_v26 }
  0xd8   :  { %v2252_v27 = vpop.eup %2251  ;;  %v532_v50 = vadd.f32 0.05243302, %v531_v25  ;;  %v2664_v56 = vadd.f32 1.0, %v306_v44  ;;  %v494_v63 = vadd.f32 0.18741608, %v493_v28  ;;  %v2670_v47 = vmul.f32 %v296_v20, %v2556_v41 }
  0xd9   :  { %v469_v36 = vmul.f32 %v2252_v27, %v467_v4  ;;  %vm474_vm2 = vweird.f32 %v2252_v27  ;;  %v501_v57 = vadd.f32 0.014752088, %v500_v46  ;;  %v340_v59 = vmul.f32 %v339_v49, %v2595_v7 }
  0xda   :  { %v540_v1 = vmul.f32 %v539_v52, %v2627_v34  ;;  %v372_v2 = vadd.f32 0.05243302, %v371_v32  ;;  %vm2673_vm3 = vmor %vm473_vm1, %vm474_vm2  ;;  %v480_v5 = vor.u32 1.1754944e-38, %v479_v43  ;;  %2253 = vrcp.f32 %v2664_v56 }
  0xdb   :  { %v470_v51 = vsub.f32 1.0, %v469_v36  ;;  %v457_v6 = vmul.f32 %v456_v22, %v2560_v42  ;;  %v2680_v40 = vmul.f32 %v334_v24, %v2595_v7  ;;  %vm478_vm4 = vcmp.eq.f32.partialorder %v477_v38, 8.507059e+37 }
  0xdc   :  { %v533_v10 = vmul.f32 %v532_v50, %v2627_v34  ;;  %v409_v41 = vmul.f32 %v408_v53, %v2654_v19  ;;  %v502_v4 = vmul.f32 %v501_v57, %v2597_v8  ;;  %v341_v11 = vadd.f32 0.014752088, %v340_v59 }
  0xdd   :  { %v471_v0 = vmul.f32 %v2252_v27, %v470_v51  ;;  %v495_v12 = vmul.f32 %v494_v63, %v2597_v8  ;;  %v541_v14 = vadd.f32 0.014752088, %v540_v1  ;;  %v378_v42 = vmul.f32 3.8918573e-05, %v2625_v33 }
  0xde   :  { %v373_v15 = vmul.f32 %v372_v2, %v2625_v33  ;;  %v503_v20 = vadd.f32 0.112945676, %v502_v4  ;;  %v342_v22 = vmul.f32 %v341_v11, %v2595_v7  ;;  %v418_v48 = vmul.f32 3.8918573e-05, %v2654_v19 }
  0xdf   :  { %v472_v9 = vadd.f32 %v2252_v27, %v471_v0  ;;  %v542_v25 = vmul.f32 %v541_v14, %v2627_v34  ;;  %v379_v26 = vadd.f32 0.001143296, %v378_v42  ;;  %v534_v29 = vadd.f32 0.18741608, %v533_v10 }
  0xe0   :  { %v2254_v28 = vpop.eup %2253  ;;  %v410_v30 = vadd.f32 0.0036580483, %v409_v41  ;;  %v343_v31 = vadd.f32 0.112945676, %v342_v22  ;;  %v317_v38 = vand.u32 2147483647, %v2664_v56  ;;  %vm313_vm6 = vweird.f32 %v2664_v56 }
  0xe1   :  { %v476_v13 = vsel %vm2673_vm3, %v2252_v27, %v472_v9  ;;  %v504_v27 = vmul.f32 %v503_v20, %v2597_v8  ;;  %v309_v36 = vmul.f32 %v2254_v28, %v2664_v56  ;;  %v543_v43 = vadd.f32 0.112945676, %v542_v25 }
  0xe2   :  { %v481_v17 = vsel %vm478_vm4, %v480_v5, %v476_v13  ;;  %v319_v44 = vand.u32 2147483648, %v2664_v56  ;;  %v344_v49 = vmul.f32 %v343_v31, %v2595_v7  ;;  %v380_v50 = vmul.f32 %v379_v26, %v2625_v33 }
  0xe3   :  { %v482_v24 = vmul.f32 %v481_v17, %v457_v6  ;;  %v505_v46 = vadd.f32 0.4994258, %v504_v27  ;;  %v310_v52 = vsub.f32 1.0, %v309_v36  ;;  %v544_v53 = vmul.f32 %v543_v43, %v2627_v34 }
  0xe4   :  { %v419_v57 = vadd.f32 0.001143296, %v418_v48  ;;  %vm314_vm5 = vweird.f32 %v2254_v28  ;;  %v345_v63 = vadd.f32 0.4994258, %v344_v49  ;;  %v381_v0 = vadd.f32 0.014752088, %v380_v50 }
  0xe5   :  { %v1939_v32 = vclamps-f32 %v482_v24, 1.0  ;;  %v506_v59 = vmul.f32 %v505_v46, %v2597_v8  ;;  %v311_v2 = vmul.f32 %v2254_v28, %v310_v52  ;;  %v545_v3 = vadd.f32 0.4994258, %v544_v53  ;;  %vm315_vm7 = vmor %vm313_vm6, %vm314_vm5 }
  0xe6   :  { %v420_v5 = vmul.f32 %v419_v57, %v2654_v19  ;;  %v535_v6 = vmul.f32 %v534_v29, %v2627_v34  ;;  %v346_v10 = vmul.f32 %v345_v63, %v2595_v7  ;;  %v382_v41 = vmul.f32 %v381_v0, %v2625_v33 }
  0xe7   :  { %v929_v51 = vadd.f32 1.0, %v1939_v32  ;;  %v507_v9 = vadd.f32 1.0, %v506_v59  ;;  %v312_v4 = vadd.f32 %v2254_v28, %v311_v2  ;;  %v546_v8 = vmul.f32 %v545_v3, %v2627_v34 }
  0xe8   :  { %v411_v11 = vmul.f32 %v410_v30, %v2654_v19  ;;  %vm318_vm8 = vcmp.eq.f32.partialorder %v317_v38, 8.507059e+37  ;;  %v320_v13 = vor.u32 1.1754944e-38, %v319_v44  ;;  %v2712_v42 = vadd.f32 1.0, %v346_v10 }
  0xe9   :  { %v2701_v1 = vmul.f32 %v929_v51, %v250_v62  ;;  %v421_v62 = vadd.f32 0.014752088, %v420_v5  ;;  %2255 = vrcp.f32 %v507_v9  ;;  %v316_v14 = vsel %vm315_vm7, %v2254_v28, %v312_v4 }
  0xea   :  { %v2714_v7 = vadd.f32 1.0, %v546_v8  ;;  %v383_v17 = vadd.f32 0.112945676, %v382_v41  ;;  %v321_v20 = vsel %vm318_vm8, %v320_v13, %v316_v14  ;;  %v496_v56 = vadd.f32 1.1283791, %v495_v12  ;;  %v223_v8 = vpop.f32.mrf.mxu1 }
  0xeb   :  { %965 = vadd.xlane.f32.xlu2 %v2701_v1  ;;  %v422_v22 = vmul.f32 %v421_v62, %v2654_v19  ;;  %v374_v24 = vadd.f32 0.18741608, %v373_v15  ;;  %v322_v34 = vmul.f32 %v321_v20, %v2670_v47  ;;  %2257 = vrcp.f32 %v2712_v42 }
  0xec   :  { %v536_v25 = vadd.f32 1.1283791, %v535_v6  ;;  %v412_v26 = vadd.f32 0.05243302, %v411_v11  ;;  %2259 = vrcp.f32 %v2714_v7  ;;  %v246_v48 = vmul.f32 0.5, %v2549_v39 }
  0xed   :  { %v336_v28 = vadd.f32 1.1283791, %v2680_v40  ;;  %v1935_v29 = vclamps-f32 %v322_v34, 1.0  ;;  %v384_v30 = vmul.f32 %v383_v17, %v2625_v33  ;;  %v2724_v31 = vmul.f32 0.5, %v2576_v55 }
  0xee   :  { %v517_v12 = vand.u32 2147483647, %v507_v9  ;;  %v519_v15 = vand.u32 2147483648, %v507_v9  ;;  %v423_v47 = vadd.f32 0.112945676, %v422_v22  ;;  %v497_v32 = vmul.f32 %v496_v56, %v2586_v61 }
  0xef   :  { %v2256_v27 = vpop.eup %2255  ;;  %v375_v36 = vmul.f32 %v374_v24, %v2625_v33  ;;  %v925_v38 = vadd.f32 1.0, %v1935_v29  ;;  %v537_v39 = vmul.f32 %v536_v25, %v2617_v23  ;;  %v413_v40 = vmul.f32 %v412_v26, %v2654_v19 }
  0xf0   :  { %v509_v43 = vmul.f32 %v2256_v27, %v507_v9  ;;  %v385_v44 = vadd.f32 0.4994258, %v384_v30  ;;  %v424_v46 = vmul.f32 %v423_v47, %v2654_v19  ;;  %vm513_vm9 = vweird.f32 %v507_v9 }
  0xf1   :  { %v2258_v49 = vpop.eup %2257  ;;  %v2731_v50 = vmul.f32 %v925_v38, %v246_v48  ;;  %vm514_vm10 = vweird.f32 %v2256_v27  ;;  %vm2733_vm11 = vcmp.eq.f32.partialorder %v517_v12, 8.507059e+37  ;;  %v520_v52 = vor.u32 1.1754944e-38, %v519_v15 }
  0xf2   :  { %v510_v55 = vsub.f32 1.0, %v509_v43  ;;  %v2260_v51 = vpop.eup %2259  ;;  %v349_v53 = vmul.f32 %v2258_v49, %v2712_v42  ;;  %v386_v23 = vmul.f32 %v385_v44, %v2625_v33  ;;  %v359_v59 = vand.u32 2147483648, %v2712_v42  ;;  %vm2743_vm13 = vmor %vm513_vm9, %vm514_vm10 }
  0xf3   :  { %957 = vadd.xlane.f32.xlu0 %v2731_v50  ;;  %v549_v63 = vmul.f32 %v2260_v51, %v2714_v7  ;;  %vm553_vm12 = vweird.f32 %v2714_v7  ;;  %v559_v3 = vand.u32 2147483648, %v2714_v7  ;;  %v425_v6 = vadd.f32 0.4994258, %v424_v46 }
  0xf4   :  { %v511_v57 = vmul.f32 %v2256_v27, %v510_v55  ;;  %v350_v2 = vsub.f32 1.0, %v349_v53  ;;  %v2748_v5 = vadd.f32 1.0, %v386_v23  ;;  %vm554_vm14 = vweird.f32 %v2260_v51 }
  0xf5   :  { %v550_v9 = vsub.f32 1.0, %v549_v63  ;;  %v557_v10 = vand.u32 2147483647, %v2714_v7  ;;  %vm354_vm15 = vweird.f32 %v2258_v49  ;;  %v357_v4 = vand.u32 2147483647, %v2712_v42  ;;  %vm2760_vm1 = vmor %vm553_vm12, %vm554_vm14 }
  0xf6   :  { %v512_v33 = vadd.f32 %v2256_v27, %v511_v57  ;;  %v351_v41 = vmul.f32 %v2258_v49, %v350_v2  ;;  %2261 = vrcp.f32 %v2748_v5  ;;  %vm353_vm0 = vweird.f32 %v2712_v42 }
  0xf7   :  { %v360_v11 = vor.u32 1.1754944e-38, %v359_v59  ;;  %v551_v13 = vmul.f32 %v2260_v51, %v550_v9  ;;  %v560_v22 = vor.u32 1.1754944e-38, %v559_v3  ;;  %v426_v56 = vmul.f32 %v425_v6, %v2654_v19  ;;  %vm355_vm2 = vmor %vm353_vm0, %vm354_vm15 }
  0xf8   :  { %v516_v62 = vsel %vm2743_vm13, %v2256_v27, %v512_v33  ;;  %v352_v17 = vadd.f32 %v2258_v49, %v351_v41  ;;  %vm558_vm3 = vcmp.eq.f32.partialorder %v557_v10, 8.507059e+37  ;;  %v2766_v42 = vadd.f32 %v2544_v35, %v223_v8  ;;  %v226_v10 = vpop.f32.mrf.mxu2 }
  0xf9   :  { %v521_v14 = vsel %vm2733_vm11, %v520_v52, %v516_v62  ;;  %v552_v34 = vadd.f32 %v2260_v51, %v551_v13  ;;  %v337_v25 = vmul.f32 %v336_v28, %v2582_v60  ;;  %vm358_vm4 = vcmp.eq.f32.partialorder %v357_v4, 8.507059e+37 }
  0xfa   :  { %v522_v24 = vmul.f32 %v521_v14, %v497_v32  ;;  %v356_v26 = vsel %vm355_vm2, %v2258_v49, %v352_v17  ;;  %v427_v48 = vadd.f32 1.0, %v426_v56  ;;  %v376_v7 = vadd.f32 1.1283791, %v375_v36 }
  0xfb   :  { %v361_v30 = vsel %vm358_vm4, %v360_v11, %v356_v26  ;;  %v556_v27 = vsel %vm2760_vm1, %v2260_v51, %v552_v34  ;;  %v414_v15 = vadd.f32 0.18741608, %v413_v40  ;;  %v2774_v60 = vmul.f32 %v2546_v37, %v2766_v42 }
  0xfc   :  { %v1940_v29 = vclamps-f32 %v522_v24, 1.0  ;;  %v2262_v12 = vpop.eup %2261  ;;  %v362_v47 = vmul.f32 %v361_v30, %v337_v25  ;;  %v561_v32 = vsel %vm558_vm3, %v560_v22, %v556_v27  ;;  %2263 = vrcp.f32 %v427_v48 }
  0xfd   :  { %v562_v43 = vmul.f32 %v561_v32, %v537_v39  ;;  %v389_v44 = vmul.f32 %v2262_v12, %v2748_v5  ;;  %vm393_vm5 = vweird.f32 %v2748_v5  ;;  %v397_v36 = vand.u32 2147483647, %v2748_v5 }
  0xfe   :  { %v930_v38 = vadd.f32 1.0, %v1940_v29  ;;  %v1936_v28 = vclamps-f32 %v362_v47, 1.0  ;;  %v399_v46 = vand.u32 2147483648, %v2748_v5  ;;  %vm394_vm6 = vweird.f32 %v2262_v12 }
  0xff   :  { %v1941_v49 = vclamps-f32 %v562_v43, 1.0  ;;  %v390_v55 = vsub.f32 1.0, %v389_v44  ;;  %v247_v39 = vmul.f32 0.5, %v2573_v54  ;;  %v415_v51 = vmul.f32 %v414_v15, %v2654_v19  ;;  %vm2791_vm7 = vmor %vm393_vm5, %vm394_vm6 }
 0x100   :  { %v2780_v40 = vmul.f32 %v930_v38, %v2724_v31  ;;  %v926_v61 = vadd.f32 1.0, %v1936_v28  ;;  %v252_v52 = vmul.f32 0.5, %v2608_v18  ;;  %v377_v59 = vmul.f32 %v376_v7, %v2613_v21  ;;  %v228_v7 = vpop.f32.mrf.mxu2 }
 0x101   :  { %v931_v53 = vadd.f32 1.0, %v1941_v49  ;;  %v391_v23 = vmul.f32 %v2262_v12, %v390_v55  ;;  %v400_v54 = vor.u32 1.1754944e-38, %v399_v46  ;;  %vm398_vm8 = vcmp.eq.f32.partialorder %v397_v36, 8.507059e+37 }
 0x102   :  { %967 = vadd.xlane.f32.xlu2 %v2780_v40  ;;  %v2264_v57 = vpop.eup %2263  ;;  %v2787_v63 = vmul.f32 %v926_v61, %v247_v39  ;;  %v565_v18 = vmul.f32 %v2774_v60, %v2774_v60  ;;  %v416_v2 = vadd.f32 1.1283791, %v415_v51  ;;  %vm433_vm9 = vweird.f32 %v427_v48 }
 0x103   :  { %v392_v19 = vadd.f32 %v2262_v12, %v391_v23  ;;  %v429_v0 = vmul.f32 %v2264_v57, %v427_v48  ;;  %v437_v21 = vand.u32 2147483647, %v427_v48  ;;  %v439_v3 = vand.u32 2147483648, %v427_v48 }
 0x104   :  { %959 = vadd.xlane.f32.xlu0 %v2787_v63  ;;  %v2798_v6 = vmul.f32 %v931_v53, %v252_v52  ;;  %vm434_vm10 = vweird.f32 %v2264_v57  ;;  %v2802_v4 = vmin.f32 %v565_v18, 16.0  ;;  %v248_v62 = vmul.f32 0.5, %v2604_v16 }
 0x105   :  { %v396_v5 = vsel %vm2791_vm7, %v2262_v12, %v392_v19  ;;  %v430_v33 = vsub.f32 1.0, %v429_v0  ;;  %vm435_vm11 = vmor %vm433_vm9, %vm434_vm10  ;;  %v440_v11 = vor.u32 1.1754944e-38, %v439_v3  ;;  %v417_v13 = vmul.f32 %v416_v2, %v2641_v58 }
 0x106   :  { %v401_v9 = vsel %vm398_vm8, %v400_v54, %v396_v5  ;;  %vm438_vm12 = vcmp.eq.f32.partialorder %v437_v21, 8.507059e+37  ;;  %v578_v56 = vmul.f32 3.8918573e-05, %v2802_v4  ;;  %v249_v26 = vmul.f32 0.5, %v2633_v45 }
 0x107   :  { %v402_v41 = vmul.f32 %v401_v9, %v377_v59  ;;  %v431_v8 = vmul.f32 %v2264_v57, %v430_v33  ;;  %v2813_v58 = vadd.f32 %v2544_v35, %v226_v10  ;;  %v2822_v12 = vadd.f32 %v2544_v35, %v228_v7 }
 0x108   :  { %v579_v48 = vadd.f32 0.001143296, %v578_v56  ;;  %v567_v51 = vmul.f32 2.1237322e-06, %v2802_v4 }
 0x109   :  { %v1937_v14 = vclamps-f32 %v402_v41, 1.0  ;;  %v432_v17 = vadd.f32 %v2264_v57, %v431_v8  ;;  %v2819_v27 = vmul.f32 %v2546_v37, %v2813_v58  ;;  %v2830_v47 = vmul.f32 %v2546_v37, %v2822_v12 }
 0x10a   :  { %969 = vadd.xlane.f32.xlu2 %v2798_v6  ;;  %v580_v45 = vmul.f32 %v579_v48, %v2802_v4  ;;  %v568_v23 = vadd.f32 0.00028619796, %v567_v51 }
 0x10b   :  { %v927_v20 = vadd.f32 1.0, %v1937_v14  ;;  %v436_v22 = vsel %vm435_vm11, %v2264_v57, %v432_v17  ;;  %v605_v15 = vmul.f32 %v2819_v27, %v2819_v27  ;;  %v645_v43 = vmul.f32 %v2830_v47, %v2830_v47 }
 0x10c   :  { %v441_v24 = vsel %vm438_vm12, %v440_v11, %v436_v22  ;;  %v581_v32 = vadd.f32 0.014752088, %v580_v45  ;;  %v569_v54 = vmul.f32 %v568_v23, %v2802_v4  ;;  %v236_v11 = vpop.f32.mrf.mxu3 }
 0x10d   :  { %v2808_v34 = vmul.f32 %v927_v20, %v248_v62  ;;  %v442_v25 = vmul.f32 %v441_v24, %v417_v13  ;;  %v2832_v38 = vmin.f32 %v605_v15, 16.0  ;;  %v2837_v28 = vmin.f32 %v645_v43, 16.0  ;;  %v231_v13 = vpop.f32.mrf.mxu2 }
 0x10e   :  { %v582_v44 = vmul.f32 %v581_v32, %v2802_v4  ;;  %v570_v3 = vadd.f32 0.0036580483, %v569_v54 }
 0x10f   :  { %961 = vadd.xlane.f32.xlu1 %v2808_v34  ;;  %v1938_v16 = vclamps-f32 %v442_v25, 1.0  ;;  %v618_v46 = vmul.f32 3.8918573e-05, %v2832_v38  ;;  %v658_v39 = vmul.f32 3.8918573e-05, %v2837_v28 }
 0x110   :  { %v583_v36 = vadd.f32 0.112945676, %v582_v44  ;;  %v607_v19 = vmul.f32 2.1237322e-06, %v2832_v38  ;;  %v647_v18 = vmul.f32 2.1237322e-06, %v2837_v28  ;;  %v571_v41 = vmul.f32 %v570_v3, %v2802_v4 }
 0x111   :  { %v928_v29 = vadd.f32 1.0, %v1938_v16  ;;  %v619_v55 = vadd.f32 0.001143296, %v618_v46  ;;  %v659_v53 = vadd.f32 0.001143296, %v658_v39  ;;  %v2860_v16 = vadd.f32 %v2544_v35, %v231_v13 }
 0x112   :  { %v584_v49 = vmul.f32 %v583_v36, %v2802_v4  ;;  %v608_v5 = vadd.f32 0.00028619796, %v607_v19  ;;  %v648_v33 = vadd.f32 0.00028619796, %v647_v18  ;;  %v572_v22 = vadd.f32 0.05243302, %v571_v41 }
 0x113   :  { %v2815_v30 = vmul.f32 %v928_v29, %v249_v26  ;;  %v620_v52 = vmul.f32 %v619_v55, %v2832_v38  ;;  %v660_v31 = vmul.f32 %v659_v53, %v2837_v28  ;;  %v2869_v43 = vmul.f32 %v2546_v37, %v2860_v16 }
 0x114   :  { %v585_v61 = vadd.f32 0.4994258, %v584_v49  ;;  %v609_v8 = vmul.f32 %v608_v5, %v2832_v38  ;;  %v649_v62 = vmul.f32 %v648_v33, %v2837_v28  ;;  %v573_v7 = vmul.f32 %v572_v22, %v2802_v4  ;;  %v238_v44 = vpop.f32.mrf.mxu3 }
 0x115   :  { %v621_v59 = vadd.f32 0.014752088, %v620_v52  ;;  %v661_v21 = vadd.f32 0.014752088, %v660_v31  ;;  %v233_v55 = vpop.f32.mrf.mxu2  ;;  %v685_v52 = vmul.f32 %v2869_v43, %v2869_v43  ;;  %v2880_v23 = vadd.f32 %v2544_v35, %v238_v44 }
 0x116   :  { %v586_v57 = vmul.f32 %v585_v61, %v2802_v4  ;;  %v610_v56 = vadd.f32 0.0036580483, %v609_v8  ;;  %v650_v24 = vadd.f32 0.0036580483, %v649_v62  ;;  %v574_v46 = vadd.f32 0.18741608, %v573_v7 }
 0x117   :  { %963 = vadd.xlane.f32.xlu1 %v2815_v30  ;;  %v622_v2 = vmul.f32 %v621_v59, %v2832_v38  ;;  %v662_v10 = vmul.f32 %v661_v21, %v2837_v28  ;;  %v2877_v53 = vadd.f32 %v2544_v35, %v233_v55  ;;  %v2891_v21 = vmin.f32 %v685_v52, 16.0 }
 0x118   :  { %v2849_v0 = vadd.f32 1.0, %v586_v57  ;;  %v611_v29 = vmul.f32 %v610_v56, %v2832_v38  ;;  %v651_v45 = vmul.f32 %v650_v24, %v2837_v28  ;;  %v575_v59 = vmul.f32 %v574_v46, %v2802_v4 }
 0x119   :  { %v623_v9 = vadd.f32 0.112945676, %v622_v2  ;;  %v663_v17 = vadd.f32 0.112945676, %v662_v10  ;;  %v2895_v4 = vmul.f32 %v2546_v37, %v2877_v53  ;;  %v2899_v3 = vmul.f32 %v2546_v37, %v2880_v23 }
 0x11a   :  { %2265 = vrcp.f32 %v2849_v0  ;;  %v612_v49 = vadd.f32 0.05243302, %v611_v29  ;;  %v652_v39 = vadd.f32 0.05243302, %v651_v45  ;;  %vm593_vm13 = vweird.f32 %v2849_v0 }
 0x11b   :  { %v624_v14 = vmul.f32 %v623_v9, %v2832_v38  ;;  %v664_v26 = vmul.f32 %v663_v17, %v2837_v28  ;;  %v599_v19 = vand.u32 2147483648, %v2849_v0  ;;  %v597_v18 = vand.u32 2147483647, %v2849_v0 }
 0x11c   :  { %v613_v31 = vmul.f32 %v612_v49, %v2832_v38  ;;  %v653_v54 = vmul.f32 %v652_v39, %v2837_v28  ;;  %v2482_v10 = vmov 128.0   ;;  %v241_v41 = vpop.f32.mrf.mxu3  ;;  %v725_v13 = vmul.f32 %v2895_v4, %v2895_v4 }
 0x11d   :  { %v625_v25 = vadd.f32 0.4994258, %v624_v14  ;;  %v665_v32 = vadd.f32 0.4994258, %v664_v26  ;;  %vm598_vm0 = vcmp.eq.f32.partialorder %v597_v18, 8.507059e+37  ;;  %v600_v62 = vor.u32 1.1754944e-38, %v599_v19 }
 0x11e   :  { %v614_v9 = vadd.f32 0.18741608, %v613_v31  ;;  %v654_v8 = vadd.f32 0.18741608, %v653_v54  ;;  %v805_v14 = vmul.f32 %v2899_v3, %v2899_v3  ;;  %v698_v22 = vmul.f32 3.8918573e-05, %v2891_v21 }
 0x11f   :  { %v626_v15 = vmul.f32 %v625_v25, %v2832_v38  ;;  %v666_v61 = vmul.f32 %v665_v32, %v2837_v28  ;;  %v2916_v24 = vadd.f32 %v2544_v35, %v236_v11  ;;  %v2919_v25 = vadd.f32 %v2544_v35, %v241_v41 }
 0x120   :  { %v2266_v20 = vpop.eup %2265  ;;  %v615_v26 = vmul.f32 %v614_v9, %v2832_v38  ;;  %v655_v29 = vmul.f32 %v654_v8, %v2837_v28  ;;  %v2928_v32 = vmin.f32 %v805_v14, 16.0  ;;  %v687_v38 = vmul.f32 2.1237322e-06, %v2891_v21 }
 0x121   :  { %v589_v48 = vmul.f32 %v2266_v20, %v2849_v0  ;;  %v2871_v51 = vadd.f32 1.0, %v626_v15  ;;  %vm594_vm14 = vweird.f32 %v2266_v20  ;;  %v2889_v2 = vadd.f32 1.0, %v666_v61 }
 0x122   :  { %vm2901_vm15 = vmor %vm593_vm13, %vm594_vm14  ;;  %v576_v0 = vadd.f32 1.1283791, %v575_v59  ;;  %v2942_v28 = vmul.f32 %v2546_v37, %v2919_v25  ;;  %v2945_v49 = vmul.f32 0.5, %v2766_v42  ;;  %v2947_v55 = vadd.f32 1.1283791, %v655_v29 }
 0x123   :  { %v590_v36 = vsub.f32 1.0, %v589_v48  ;;  %2267 = vrcp.f32 %v2871_v51  ;;  %v699_v48 = vadd.f32 0.001143296, %v698_v22  ;;  %v818_v31 = vmul.f32 3.8918573e-05, %v2928_v32 }
 0x124   :  { %2269 = vrcp.f32 %v2482_v10  ;;  %v577_v7 = vmul.f32 %v576_v0, %v2774_v60  ;;  %v2938_v60 = vmul.f32 %v2546_v37, %v2916_v24  ;;  %v688_v54 = vadd.f32 0.00028619796, %v687_v38 }
 0x125   :  { %v591_v57 = vmul.f32 %v2266_v20, %v590_v36  ;;  %2271 = vrcp.f32 %v2889_v2  ;;  %v700_v35 = vmul.f32 %v699_v48, %v2891_v21  ;;  %v616_v36 = vadd.f32 1.1283791, %v615_v26 }
 0x126   :  { %v765_v19 = vmul.f32 %v2938_v60, %v2938_v60  ;;  %v845_v42 = vmul.f32 %v2942_v28, %v2942_v28  ;;  %v819_v9 = vadd.f32 0.001143296, %v818_v31  ;;  %v807_v10 = vmul.f32 2.1237322e-06, %v2928_v32 }
 0x127   :  { %v592_v5 = vadd.f32 %v2266_v20, %v591_v57  ;;  %v701_v46 = vadd.f32 0.014752088, %v700_v35  ;;  %vm633_vm1 = vweird.f32 %v2871_v51  ;;  %v637_v38 = vand.u32 2147483647, %v2871_v51 }
 0x128   :  { %v820_v22 = vmul.f32 %v819_v9, %v2928_v32  ;;  %v2974_v26 = vmin.f32 %v765_v19, 16.0  ;;  %v2976_v48 = vmin.f32 %v845_v42, 16.0  ;;  %vm673_vm6 = vweird.f32 %v2889_v2 }
 0x129   :  { %v596_v17 = vsel %vm2901_vm15, %v2266_v20, %v592_v5  ;;  %v2913_v56 = vpop.eup %2267  ;;  %v2926_v20 = vmin.f32 %v725_v13, 16.0  ;;  %v702_v57 = vmul.f32 %v701_v46, %v2891_v21  ;;  %v2964_v5 = vmul.f32 %v616_v36, %v2819_v27 }
 0x12a   :  { %v601_v45 = vsel %vm598_vm0, %v600_v62, %v596_v17  ;;  %v2924_v15 = vpop.eup %2269  ;;  %v629_v11 = vmul.f32 %v2913_v56, %v2871_v51  ;;  %v639_v62 = vand.u32 2147483648, %v2871_v51  ;;  %v689_v27 = vmul.f32 %v688_v54, %v2891_v21 }
 0x12b   :  { %v2933_v44 = vpop.eup %2271  ;;  %v990_v39 = vmul.f32 128.0, %v2924_v15  ;;  %v2950_v61 = vmul.f32 %v601_v45, %v577_v7  ;;  %v738_v59 = vmul.f32 3.8918573e-05, %v2926_v20  ;;  %v703_v33 = vadd.f32 0.112945676, %v702_v57 }
 0x12c   :  { %v630_v52 = vsub.f32 1.0, %v629_v11  ;;  %v2961_v18 = vmul.f32 %v2933_v44, %v2889_v2  ;;  %vm634_vm2 = vweird.f32 %v2913_v56  ;;  %v821_v45 = vadd.f32 0.014752088, %v820_v22 }
 0x12d   :  { %v739_v0 = vadd.f32 0.001143296, %v738_v59  ;;  %v991_v41 = vsub.f32 1.0, %v990_v39  ;;  %v1942_v8 = vclamps-f32 %v2950_v61, 1.0  ;;  %v704_v14 = vmul.f32 %v703_v33, %v2891_v21  ;;  %vm2995_vm4 = vmor %vm633_vm1, %vm634_vm2 }
 0x12e   :  { %v631_v13 = vmul.f32 %v2913_v56, %v630_v52  ;;  %v670_v7 = vsub.f32 1.0, %v2961_v18  ;;  %v808_v11 = vadd.f32 0.00028619796, %v807_v10  ;;  %v640_v36 = vor.u32 1.1754944e-38, %v639_v62 }
 0x12f   :  { %v740_v17 = vmul.f32 %v739_v0, %v2926_v20  ;;  %v992_v35 = vmul.f32 %v2924_v15, %v991_v41  ;;  %v847_v46 = vmul.f32 2.1237322e-06, %v2976_v48  ;;  %v705_v39 = vadd.f32 0.4994258, %v704_v14 }
 0x130   :  { %v822_v57 = vmul.f32 %v821_v45, %v2928_v32  ;;  %v690_v59 = vadd.f32 0.0036580483, %v689_v27  ;;  %v632_v31 = vadd.f32 %v2913_v56, %v631_v13  ;;  %v778_v54 = vmul.f32 3.8918573e-05, %v2974_v26 }
 0x131   :  { %v741_v29 = vadd.f32 0.014752088, %v740_v17  ;;  %v858_v19 = vmul.f32 3.8918573e-05, %v2976_v48  ;;  %v727_v42 = vmul.f32 2.1237322e-06, %v2926_v20  ;;  %vm994_vm3 = vweird.f32 %v2924_v15 }
 0x132   :  { %v823_v0 = vadd.f32 0.112945676, %v822_v57  ;;  %v809_v9 = vmul.f32 %v808_v11, %v2928_v32  ;;  %v993_v10 = vadd.f32 %v2924_v15, %v992_v35  ;;  %v779_v41 = vadd.f32 0.001143296, %v778_v54 }
 0x133   :  { %v742_v52 = vmul.f32 %v741_v29, %v2926_v20  ;;  %v859_v62 = vadd.f32 0.001143296, %v858_v19  ;;  %v848_v13 = vadd.f32 0.00028619796, %v847_v46  ;;  %v706_v14 = vmul.f32 %v705_v39, %v2891_v21 }
 0x134   :  { %v824_v22 = vmul.f32 %v823_v0, %v2928_v32  ;;  %v767_v51 = vmul.f32 2.1237322e-06, %v2974_v26  ;;  %v636_v27 = vsel %vm2995_vm4, %v2913_v56, %v632_v31  ;;  %v780_v29 = vmul.f32 %v779_v41, %v2974_v26 }
 0x135   :  { %v743_v33 = vadd.f32 0.112945676, %v742_v52  ;;  %v860_v45 = vmul.f32 %v859_v62, %v2976_v48  ;;  %v691_v11 = vmul.f32 %v690_v59, %v2891_v21  ;;  %v728_v35 = vadd.f32 0.00028619796, %v727_v42 }
 0x136   :  { %vm638_vm5 = vcmp.eq.f32.partialorder %v637_v38, 8.507059e+37  ;;  %v825_v46 = vadd.f32 0.4994258, %v824_v22  ;;  %v810_v39 = vadd.f32 0.0036580483, %v809_v9  ;;  %v3014_v52 = vsel %vm994_vm3, %v2924_v15, %v993_v10 }
 0x137   :  { %v744_v17 = vmul.f32 %v743_v33, %v2926_v20  ;;  %v781_v57 = vadd.f32 0.014752088, %v780_v29  ;;  %v861_v54 = vadd.f32 0.014752088, %v860_v45  ;;  %v849_v19 = vmul.f32 %v848_v13, %v2976_v48 }
 0x138   :  { %v3017_v56 = vadd.f32 1.0, %v706_v14  ;;  %v826_v18 = vmul.f32 %v825_v46, %v2928_v32  ;;  %v641_v33 = vsel %vm638_vm5, %v640_v36, %v636_v27  ;;  %v679_v59 = vand.u32 2147483648, %v2889_v2 }
 0x139   :  { %v745_v31 = vadd.f32 0.4994258, %v744_v17  ;;  %v782_v38 = vmul.f32 %v781_v57, %v2974_v26  ;;  %v862_v42 = vmul.f32 %v861_v54, %v2976_v48  ;;  %v692_v0 = vadd.f32 0.05243302, %v691_v11 }
 0x13a   :  { %v768_v9 = vadd.f32 0.00028619796, %v767_v51  ;;  %v729_v15 = vmul.f32 %v728_v35, %v2926_v20  ;;  %v3024_v41 = vadd.f32 1.0, %v826_v18  ;;  %v811_v62 = vmul.f32 %v810_v39, %v2928_v32 }
 0x13b   :  { %v783_v14 = vadd.f32 0.112945676, %v782_v38  ;;  %v863_v17 = vadd.f32 0.112945676, %v862_v42  ;;  %v850_v36 = vadd.f32 0.0036580483, %v849_v19  ;;  %v671_v22 = vmul.f32 %v2933_v44, %v670_v7 }
 0x13c   :  { %2273 = vrcp.f32 %v3017_v56  ;;  %v746_v27 = vmul.f32 %v745_v31, %v2926_v20  ;;  %v730_v45 = vadd.f32 0.0036580483, %v729_v15  ;;  %v642_v11 = vmul.f32 %v641_v33, %v2964_v5 }
 0x13d   :  { %2275 = vrcp.f32 %v3024_v41  ;;  %v784_v29 = vmul.f32 %v783_v14, %v2974_v26  ;;  %vm674_vm7 = vweird.f32 %v2933_v44  ;;  %v864_v7 = vmul.f32 %v863_v17, %v2976_v48 }
 0x13e   :  { %v693_v35 = vmul.f32 %v692_v0, %v2891_v21  ;;  %v769_v46 = vmul.f32 %v768_v9, %v2974_v26  ;;  %v812_v39 = vadd.f32 0.05243302, %v811_v62  ;;  %v254_v57 = vmul.f32 0.5, %v2813_v58  ;;  %vm3063_vm8 = vmor %vm673_vm6, %vm674_vm7 }
 0x13f   :  { %v851_v19 = vmul.f32 %v850_v36, %v2976_v48  ;;  %v3048_v31 = vadd.f32 1.0, %v746_v27  ;;  %v865_v5 = vadd.f32 0.4994258, %v864_v7  ;;  %v657_v18 = vmul.f32 %v2947_v55, %v2830_v47 }
 0x140   :  { %v672_v33 = vadd.f32 %v2933_v44, %v671_v22  ;;  %v677_v38 = vand.u32 2147483647, %v2889_v2  ;;  %v785_v42 = vadd.f32 0.4994258, %v784_v29  ;;  %v731_v58 = vmul.f32 %v730_v45, %v2926_v20 }
 0x141   :  { %v932_v9 = vadd.f32 1.0, %v1942_v8  ;;  %v1943_v15 = vclamps-f32 %v642_v11, 1.0  ;;  %v866_v55 = vmul.f32 %v865_v5, %v2976_v48  ;;  %v694_v62 = vadd.f32 0.18741608, %v693_v35 }
 0x142   :  { %v3054_v0 = vpop.eup %2273  ;;  %v813_v14 = vmul.f32 %v812_v39, %v2928_v32  ;;  %v680_v17 = vor.u32 1.1754944e-38, %v679_v59  ;;  %v852_v61 = vadd.f32 0.05243302, %v851_v19  ;;  %2277 = vrcp.f32 %v3048_v31 }
 0x143   :  { %v3074_v2 = vadd.f32 1.0, %v866_v55  ;;  %v676_v36 = vsel %vm3063_vm8, %v2933_v44, %v672_v33  ;;  %vm678_vm9 = vcmp.eq.f32.partialorder %v677_v38, 8.507059e+37  ;;  %v709_v22 = vmul.f32 %v3054_v0, %v3017_v56 }
 0x144   :  { %v786_v27 = vmul.f32 %v785_v42, %v2974_v26  ;;  %v732_v29 = vadd.f32 0.05243302, %v731_v58  ;;  %v3083_v59 = vmul.f32 %v932_v9, %v2945_v49  ;;  %v933_v45 = vadd.f32 1.0, %v1943_v15 }
 0x145   :  { %v695_v7 = vmul.f32 %v694_v62, %v2891_v21  ;;  %2279 = vrcp.f32 %v3074_v2  ;;  %v853_v44 = vmul.f32 %v852_v61, %v2976_v48  ;;  %v681_v39 = vsel %vm678_vm9, %v680_v17, %v676_v36 }
 0x146   :  { %v3090_v19 = vadd.f32 1.0, %v786_v27  ;;  %v733_v49 = vmul.f32 %v732_v29, %v2926_v20  ;;  %v3095_v38 = vmul.f32 %v933_v45, %v254_v57  ;;  %v3099_v47 = vmul.f32 %v681_v39, %v657_v18 }
 0x147   :  { %v696_v42 = vadd.f32 1.1283791, %v695_v7  ;;  %v854_v55 = vadd.f32 0.18741608, %v853_v44  ;;  %vm833_vm10 = vweird.f32 %v3024_v41  ;;  %v839_v17 = vand.u32 2147483648, %v3024_v41 }
 0x148   :  { %2281 = vrcp.f32 %v3090_v19  ;;  %vm713_vm12 = vweird.f32 %v3017_v56  ;;  %vm714_vm13 = vweird.f32 %v3054_v0  ;;  %v719_v45 = vand.u32 2147483648, %v3017_v56 }
 0x149   :  { %vm3135_vm15 = vmor %vm713_vm12, %vm714_vm13  ;;  %vm873_vm2 = vweird.f32 %v3074_v2  ;;  %vm753_vm4 = vweird.f32 %v3048_v31  ;;  %v759_v27 = vand.u32 2147483648, %v3048_v31 }
 0x15e   :  { %v3045_v54 = vpop.xlane.xlu2 %965 }
 0x166   :  { %v958_v10 = vpop.xlane.xlu0 %957 }
 0x167   :  { %v996_v13 = vmul.f32 %v3014_v52, %v958_v10  ;;  %v3068_v10 = vpop.eup %2275 }
 0x168   :  { %v829_v8 = vmul.f32 %v3068_v10, %v3024_v41  ;;  %v3092_v5 = vpop.eup %2277  ;;  %vm834_vm11 = vweird.f32 %v3068_v10 }
 0x169   :  { %v3032_v51 = vsub.f32 %v2731_v50, %v996_v13  ;;  %v770_v13 = vadd.f32 0.0036580483, %v769_v46  ;;  %v814_v46 = vadd.f32 0.18741608, %v813_v14  ;;  %v749_v14 = vmul.f32 %v3092_v5, %v3048_v31  ;;  %vm3121_vm14 = vmor %vm833_vm10, %vm834_vm11 }
 0x16a   :  { %v830_v11 = vsub.f32 1.0, %v829_v8  ;;  %v837_v8 = vand.u32 2147483647, %v3024_v41  ;;  %v717_v41 = vand.u32 2147483647, %v3017_v56  ;;  %vm754_vm5 = vweird.f32 %v3092_v5 }
 0x16b   :  { %v1028_v50 = vmul.f32 %v3032_v51, %v3032_v51  ;;  %v771_v35 = vmul.f32 %v770_v13, %v2974_v26  ;;  %v815_v9 = vmul.f32 %v814_v46, %v2928_v32  ;;  %v3104_v13 = vpop.eup %2279  ;;  %v734_v32 = vadd.f32 0.18741608, %v733_v49  ;;  %vm3194_vm7 = vmor %vm753_vm4, %vm754_vm5 }
 0x16c   :  { %v831_v21 = vmul.f32 %v3068_v10, %v830_v11  ;;  %v869_v11 = vmul.f32 %v3104_v13, %v3074_v2  ;;  %v840_v46 = vor.u32 1.1754944e-38, %v839_v17  ;;  %vm838_vm0 = vcmp.eq.f32.partialorder %v837_v8, 8.507059e+37 }
 0x16d   :  { %1044 = vadd.xlane.f32.xlu0 %v1028_v50  ;;  %v710_v50 = vsub.f32 1.0, %v709_v22  ;;  %v772_v58 = vadd.f32 0.05243302, %v771_v35  ;;  %v816_v36 = vadd.f32 1.1283791, %v815_v9  ;;  %v750_v35 = vsub.f32 1.0, %v749_v14 }
 0x16e   :  { %v832_v61 = vadd.f32 %v3068_v10, %v831_v21  ;;  %v697_v49 = vmul.f32 %v696_v42, %v2869_v43  ;;  %v735_v56 = vmul.f32 %v734_v32, %v2926_v20  ;;  %v1944_v21 = vclamps-f32 %v3099_v47, 1.0 }
 0x16f   :  { %v711_v57 = vmul.f32 %v3054_v0, %v710_v50  ;;  %v773_v44 = vmul.f32 %v772_v58, %v2974_v26  ;;  %v3142_v50 = vpop.eup %2281  ;;  %v817_v58 = vmul.f32 %v816_v36, %v2899_v3  ;;  %vm3154_vm1 = vcmp.eq.f32.partialorder %v717_v41, 8.507059e+37 }
 0x170   :  { %v836_v39 = vsel %vm3121_vm14, %v3068_v10, %v832_v61  ;;  %v751_v43 = vmul.f32 %v3092_v5, %v750_v35  ;;  %v789_v42 = vmul.f32 %v3142_v50, %v3090_v19  ;;  %vm874_vm3 = vweird.f32 %v3104_v13 }
 0x171   :  { %v712_v7 = vadd.f32 %v3054_v0, %v711_v57  ;;  %v877_v17 = vand.u32 2147483647, %v3074_v2  ;;  %vm3172_vm6 = vmor %vm873_vm2, %vm874_vm3  ;;  %v879_v8 = vand.u32 2147483648, %v3074_v2  ;;  %v760_v57 = vor.u32 1.1754944e-38, %v759_v27 }
 0x172   :  { %vm793_vm10 = vweird.f32 %v3090_v19  ;;  %vm794_vm11 = vweird.f32 %v3142_v50  ;;  %v260_v27 = vmul.f32 0.5, %v2919_v25 }
 0x173   :  { %v716_v10 = vsel %vm3135_vm15, %v3054_v0, %v712_v7  ;;  %v880_v7 = vor.u32 1.1754944e-38, %v879_v8  ;;  %vm878_vm8 = vcmp.eq.f32.partialorder %v877_v17, 8.507059e+37  ;;  %vm3230_vm12 = vmor %vm793_vm10, %vm794_vm11 }
 0x175   :  { %971 = vadd.xlane.f32.xlu0 %v3083_v59  ;;  %v968_v33 = vpop.xlane.xlu2 %967 }
 0x176   :  { %v1001_v22 = vmul.f32 %v3014_v52, %v968_v33 }
 0x177   :  { %v960_v15 = vpop.xlane.xlu0 %959 }
 0x178   :  { %v997_v62 = vmul.f32 %v3014_v52, %v960_v15  ;;  %v3147_v33 = vsub.f32 %v2780_v40, %v1001_v22  ;;  %v841_v40 = vsel %vm838_vm0, %v840_v46, %v836_v39  ;;  %v774_v46 = vadd.f32 0.18741608, %v773_v44 }
 0x179   :  { %v255_v39 = vmul.f32 0.5, %v2822_v12 }
 0x17a   :  { %v3112_v18 = vsub.f32 %v2787_v63, %v997_v62  ;;  %v855_v63 = vmul.f32 %v854_v55, %v2976_v48  ;;  %v720_v55 = vor.u32 1.1754944e-38, %v719_v45  ;;  %v870_v62 = vsub.f32 1.0, %v869_v11 }
 0x17b   :  { %v1033_v14 = vmul.f32 %v3147_v33, %v3147_v33  ;;  %v757_v45 = vand.u32 2147483647, %v3048_v31  ;;  %v790_v11 = vsub.f32 1.0, %v789_v42  ;;  %v736_v48 = vadd.f32 1.1283791, %v735_v56 }
 0x17c   :  { %v1029_v29 = vmul.f32 %v3112_v18, %v3112_v18  ;;  %v856_v9 = vadd.f32 1.1283791, %v855_v63  ;;  %v871_v3 = vmul.f32 %v3104_v13, %v870_v62  ;;  %v721_v22 = vsel %vm3154_vm1, %v720_v55, %v716_v10 }
 0x17d   :  { %973 = vadd.xlane.f32.xlu0 %v3095_v38  ;;  %v970_v15 = vpop.xlane.xlu2 %969  ;;  %v842_v63 = vmul.f32 %v841_v40, %v817_v58  ;;  %v259_v58 = vmul.f32 0.5, %v2880_v23  ;;  %v934_v62 = vadd.f32 1.0, %v1944_v21  ;;  %vm758_vm9 = vcmp.eq.f32.partialorder %v757_v45, 8.507059e+37 }
 0x17e   :  { %1046 = vadd.xlane.f32.xlu1 %v1029_v29  ;;  %v1002_v47 = vmul.f32 %v3014_v52, %v970_v15  ;;  %v872_v32 = vadd.f32 %v3104_v13, %v871_v3  ;;  %v752_v29 = vadd.f32 %v3092_v5, %v751_v43  ;;  %v857_v15 = vmul.f32 %v856_v9, %v2942_v28 }
 0x17f   :  { %v1948_v31 = vclamps-f32 %v842_v63, 1.0  ;;  %v791_v12 = vmul.f32 %v3142_v50, %v790_v11  ;;  %v775_v23 = vmul.f32 %v774_v46, %v2974_v26  ;;  %v737_v28 = vmul.f32 %v736_v48, %v2895_v4 }
 0x180   :  { %v3186_v41 = vsub.f32 %v2798_v6, %v1002_v47  ;;  %v876_v35 = vsel %vm3172_vm6, %v3104_v13, %v872_v32  ;;  %v722_v6 = vmul.f32 %v721_v22, %v697_v49  ;;  %v756_v10 = vsel %vm3194_vm7, %v3092_v5, %v752_v29  ;;  %v243_v22 = vpop.f32.mrf.mxu3 }
 0x181   :  { %v881_v13 = vsel %vm878_vm8, %v880_v7, %v876_v35  ;;  %v938_v5 = vadd.f32 1.0, %v1948_v31  ;;  %v3218_v43 = vmul.f32 %v934_v62, %v255_v39  ;;  %v761_v40 = vsel %vm758_vm9, %v760_v57, %v756_v10 }
 0x182   :  { %v962_v20 = vpop.xlane.xlu1 %961  ;;  %v1034_v49 = vmul.f32 %v3186_v41, %v3186_v41  ;;  %v1945_v56 = vclamps-f32 %v722_v6, 1.0  ;;  %v882_v9 = vmul.f32 %v881_v13, %v857_v15  ;;  %v1000_v26 = vmul.f32 %v3014_v52, %v3045_v54 }
 0x183   :  { %v998_v0 = vmul.f32 %v3014_v52, %v962_v20  ;;  %v799_v20 = vand.u32 2147483648, %v3090_v19  ;;  %v792_v42 = vadd.f32 %v3142_v50, %v791_v12  ;;  %v256_v3 = vmul.f32 0.5, %v2860_v16 }
 0x184   :  { %v776_v47 = vadd.f32 1.1283791, %v775_v23  ;;  %v935_v54 = vadd.f32 1.0, %v1945_v56  ;;  %v3235_v17 = vmul.f32 %v938_v5, %v259_v58  ;;  %v1949_v32 = vclamps-f32 %v882_v9, 1.0 }
 0x185   :  { %v3178_v36 = vsub.f32 %v2808_v34, %v998_v0  ;;  %1054 = vadd.xlane.f32.xlu0 %v1033_v14  ;;  %v762_v14 = vmul.f32 %v761_v40, %v737_v28  ;;  %v800_v61 = vor.u32 1.1754944e-38, %v799_v20  ;;  %v3238_v8 = vsub.f32 %v2701_v1, %v1000_v26  ;;  %v2099_v0 = vld [vmem:[#allocation11 + $0xf0] sm:$0xf0] }
 0x186   :  { %v796_v16 = vsel %vm3230_vm12, %v3142_v50, %v792_v42  ;;  %v3245_v63 = vmul.f32 %v935_v54, %v256_v3  ;;  %v939_v45 = vadd.f32 1.0, %v1949_v32  ;;  %v2317_v50 = vld [vmem:[%s3586_s2] ss:$0 sm:$0xff]  ;;  %v2097_v42 = vld [vmem:[#allocation11 + $0xe0] sm:$0xf] }
 0x187   :  { %v1030_v34 = vmul.f32 %v3178_v36, %v3178_v36  ;;  %v1946_v29 = vclamps-f32 %v762_v14, 1.0  ;;  %v1032_v1 = vmul.f32 %v3238_v8, %v3238_v8  ;;  %v3253_v7 = vadd.f32 %v2317_v50, %v243_v22  ;;  %v2155_v3 = vld [vmem:[#allocation11 + $0xe4] sm:$0xf]  ;;  %v2105_v54 = vld [vmem:[#allocation11 + $0xe8] sm:$0xf] }
 0x188   :  { %v3257_v2 = vmul.f32 %v939_v45, %v260_v27  ;;  %v2158_v14 = vld [vmem:[#allocation11 + $0xf4] sm:$0xf0]  ;;  %v2107_v22 = vld [vmem:[#allocation11 + $0xf8] sm:$0xf0]  ;;  %v2081_v45 = vld [vmem:[#allocation11 + $0xc0] sm:$0xf] }
 0x189   :  { %1048 = vadd.xlane.f32.xlu1 %v1030_v34  ;;  %v936_v25 = vadd.f32 1.0, %v1946_v29  ;;  %v3261_v35 = vmul.f32 %v2546_v37, %v3253_v7 }
 0x18a   :  { %v964_v55 = vpop.xlane.xlu1 %963 }
 0x18b   :  { %v999_v44 = vmul.f32 %v3014_v52, %v964_v55  ;;  %v885_v6 = vmul.f32 %v3261_v35, %v3261_v35 }
 0x18d   :  { %v3215_v21 = vsub.f32 %v2815_v30, %v999_v44  ;;  %1056 = vadd.xlane.f32.xlu0 %v1034_v49  ;;  %v797_v30 = vand.u32 2147483647, %v3090_v19  ;;  %v777_v19 = vmul.f32 %v776_v47, %v2938_v60  ;;  %v257_v60 = vmul.f32 0.5, %v2877_v53 }
 0x18e   :  { %v258_v53 = vmul.f32 0.5, %v2916_v24  ;;  %v886_v58 = vmin.f32 %v885_v6, 16.0 }
 0x18f   :  { %v1031_v4 = vmul.f32 %v3215_v21, %v3215_v21  ;;  %vm798_vm13 = vcmp.eq.f32.partialorder %v797_v30, 8.507059e+37  ;;  %v3263_v46 = vmul.f32 %v936_v25, %v257_v60  ;;  %v2157_v30 = vld [vmem:[#allocation11 + $0xec] sm:$0xf0]  ;;  %v2083_v60 = vld [vmem:[#allocation11 + $0xd0] sm:$0xf0] }
 0x190   :  { %v801_v11 = vsel %vm798_vm13, %v800_v61, %v796_v16  ;;  %v898_v31 = vmul.f32 3.8918573e-05, %v886_v58  ;;  %v887_v13 = vmul.f32 2.1237322e-06, %v886_v58  ;;  %v2098_v47 = vor.u32 %v2157_v30, %v2097_v42  ;;  %v2089_v25 = vld [vmem:[#allocation11 + $0xc8] sm:$0xf] }
 0x191   :  { %1050 = vadd.xlane.f32.xlu2 %v1031_v4  ;;  %975 = vadd.xlane.f32.xlu1 %v3218_v43  ;;  %v802_v34 = vmul.f32 %v801_v11, %v777_v19  ;;  %v2102_v61 = vor.u32 %v2155_v3, %v2099_v0  ;;  %v2106_v16 = vor.u32 %v2158_v14, %v2105_v54  ;;  %v2156_v19 = vld [vmem:[#allocation11 + $0xec] sm:$0xf]  ;;  %v2153_v11 = vld [vmem:[#allocation11 + $0xcc] sm:$0xf0]  ;;  %v2049_v0 = vld [vmem:[#allocation11 + $0x80] sm:$0xf] }
 0x192   :  { %v899_v37 = vadd.f32 0.001143296, %v898_v31  ;;  %v888_v49 = vadd.f32 0.00028619796, %v887_v13  ;;  %1622 = vmatpush.bf16.msrb.mxu1 %v2098_v47  ;;  %v2110_v29 = vor.u32 %v2156_v19, %v2107_v22  ;;  %v2082_v50 = vor.u32 %v2153_v11, %v2081_v45  ;;  %v2091_v31 = vld [vmem:[#allocation11 + $0xd8] sm:$0xf0] }
 0x193   :  { %v1947_v48 = vclamps-f32 %v802_v34, 1.0  ;;  %1671 = vmatpush.bf16.msrb.mxu2 %v2102_v61  ;;  %1720 = vmatpush.bf16.msrb.mxu3 %v2106_v16  ;;  %v2154_v34 = vld [vmem:[#allocation11 + $0xd4] sm:$0xf0]  ;;  %v2065_v13 = vld [vmem:[#allocation11 + $0xa0] sm:$0xf] }
 0x194   :  { %v900_v55 = vmul.f32 %v899_v37, %v886_v58  ;;  %v889_v23 = vmul.f32 %v888_v49, %v886_v58  ;;  %1769 = vmatpush.bf16.msrb.mxu0 %v2110_v29  ;;  %v2147_v49 = vld [vmem:[#allocation11 + $0xa4] sm:$0xf]  ;;  %v2145_v54 = vld [vmem:[#allocation11 + $0x8c] sm:$0xf0]  ;;  %v2051_v61 = vld [vmem:[#allocation11 + $0x90] sm:$0xf0] }
 0x195   :  { %983 = vadd.xlane.f32.xlu0 %v3235_v17  ;;  %v937_v39 = vadd.f32 1.0, %v1947_v48  ;;  %v2143_v14 = vld [vmem:[#allocation11 + $0x84] sm:$0xf]  ;;  %v2057_v16 = vld [vmem:[#allocation11 + $0x88] sm:$0xf] }
 0x196   :  { %v901_v62 = vadd.f32 0.014752088, %v900_v55  ;;  %v890_v28 = vadd.f32 0.0036580483, %v889_v23  ;;  %1623 = vmatpush.bf16.msrb.mxu1 %v2082_v50  ;;  %v2146_v19 = vld [vmem:[#allocation11 + $0x94] sm:$0xf0] }
 0x197   :  { %v3270_v15 = vmul.f32 %v937_v39, %v258_v53  ;;  %v2090_v39 = vor.u32 %v2154_v34, %v2089_v25  ;;  %v2058_v29 = vor.u32 %v2146_v19, %v2057_v16  ;;  %v2144_v45 = vld [vmem:[#allocation11 + $0x8c] sm:$0xf]  ;;  %v2033_v25 = vld [vmem:[#allocation11 + $0x60] sm:$0xf]  ;;  %v2141_v34 = vld [vmem:[#allocation11 + $0x6c] sm:$0xf0] }
 0x198   :  { %v902_v10 = vmul.f32 %v901_v62, %v886_v58  ;;  %v891_v5 = vmul.f32 %v890_v28, %v886_v58  ;;  %v2073_v28 = vld [vmem:[#allocation11 + $0xa8] sm:$0xf]  ;;  %v2027_v3 = vld [vmem:[#allocation11 + $0x58] sm:$0xf0]  ;;  %v2001_v16 = vld [vmem:[#allocation11 + $0x20] sm:$0xf] }
 0x199   :  { %1052 = vadd.xlane.f32.xlu2 %v1032_v1  ;;  %977 = vadd.xlane.f32.xlu1 %v3245_v63  ;;  %v2151_v1 = vld [vmem:[#allocation11 + $0xc4] sm:$0xf]  ;;  %v2133_v19 = vld [vmem:[#allocation11 + $0x2c] sm:$0xf0] }
 0x19a   :  { %v903_v57 = vadd.f32 0.112945676, %v902_v10  ;;  %v892_v9 = vadd.f32 0.05243302, %v891_v5  ;;  %v2086_v53 = vor.u32 %v2151_v1, %v2083_v60  ;;  %1721 = vmatpush.bf16.msrb.mxu3 %v2090_v39 }
 0x19c   :  { %v904_v44 = vmul.f32 %v903_v57, %v886_v58  ;;  %v893_v40 = vmul.f32 %v892_v9, %v886_v58  ;;  %1672 = vmatpush.bf16.msrb.mxu2 %v2086_v53  ;;  %v2150_v9 = vld [vmem:[#allocation11 + $0xb4] sm:$0xf0] }
 0x19d   :  { %985 = vadd.xlane.f32.xlu0 %v3257_v2  ;;  %v2074_v42 = vor.u32 %v2150_v9, %v2073_v28  ;;  %v2025_v9 = vld [vmem:[#allocation11 + $0x48] sm:$0xf] }
 0x19e   :  { %v905_v12 = vadd.f32 0.4994258, %v904_v44  ;;  %v894_v26 = vadd.f32 0.18741608, %v893_v40  ;;  %v2149_v44 = vld [vmem:[#allocation11 + $0xac] sm:$0xf0] }
 0x19f   :  { %v2066_v23 = vor.u32 %v2149_v44, %v2065_v13  ;;  %v2148_v40 = vld [vmem:[#allocation11 + $0xac] sm:$0xf]  ;;  %1722 = vmatpush.bf16.msrb.mxu3 %v2074_v42 }
 0x1a0   :  { %v906_v24 = vmul.f32 %v905_v12, %v886_v58  ;;  %v895_v32 = vmul.f32 %v894_v26, %v886_v58  ;;  %v2152_v58 = vld [vmem:[#allocation11 + $0xcc] sm:$0xf]  ;;  %v2075_v26 = vld [vmem:[#allocation11 + $0xb8] sm:$0xf0] }
 0x1a1   :  { %979 = vadd.xlane.f32.xlu2 %v3263_v46  ;;  %v2094_v62 = vor.u32 %v2152_v58, %v2091_v31  ;;  %1624 = vmatpush.bf16.msrb.mxu1 %v2066_v23  ;;  %v2078_v30 = vor.u32 %v2148_v40, %v2075_v26  ;;  %v2035_v31 = vld [vmem:[#allocation11 + $0x70] sm:$0xf0]  ;;  %v2137_v23 = vld [vmem:[#allocation11 + $0x4c] sm:$0xf0]  ;;  %v2138_v40 = vld [vmem:[#allocation11 + $0x54] sm:$0xf0] }
 0x1a2   :  { %v3273_v56 = vadd.f32 1.0, %v906_v24  ;;  %v896_v48 = vadd.f32 1.1283791, %v895_v32  ;;  %v2067_v24 = vld [vmem:[#allocation11 + $0xb0] sm:$0xf0]  ;;  %v2050_v32 = vor.u32 %v2145_v54, %v2049_v0  ;;  %v2026_v42 = vor.u32 %v2138_v40, %v2025_v9 }
 0x1a3   :  { %1770 = vmatpush.bf16.msrb.mxu0 %v2094_v62  ;;  %v2070_v5 = vor.u32 %v2147_v49, %v2067_v24  ;;  %1723 = vmatpush.bf16.msrb.mxu3 %v2058_v29  ;;  %v2017_v49 = vld [vmem:[#allocation11 + $0x40] sm:$0xf]  ;;  %v2135_v24 = vld [vmem:[#allocation11 + $0x44] sm:$0xf] }
 0x1a4   :  { %2283 = vrcp.f32 %v3273_v56  ;;  %v917_v10 = vand.u32 2147483647, %v3273_v56  ;;  %v919_v57 = vand.u32 2147483648, %v3273_v56  ;;  %vm913_vm14 = vweird.f32 %v3273_v56  ;;  %v2131_v29 = vld [vmem:[#allocation11 + $0x24] sm:$0xf] }
 0x1a5   :  { %1673 = vmatpush.bf16.msrb.mxu2 %v2070_v5  ;;  %1625 = vmatpush.bf16.msrb.mxu1 %v2050_v32  ;;  %v897_v60 = vmul.f32 %v896_v48, %v3261_v35  ;;  %v2043_v35 = vld [vmem:[#allocation11 + $0x78] sm:$0xf0]  ;;  %v2018_v28 = vor.u32 %v2137_v23, %v2017_v49  ;;  %v2019_v5 = vld [vmem:[#allocation11 + $0x50] sm:$0xf0]  ;;  %v2128_v49 = vld [vmem:[#allocation11 + $0xc] sm:$0xf] }
 0x1a6   :  { %v920_v47 = vor.u32 1.1754944e-38, %v919_v57  ;;  %vm918_vm1 = vcmp.eq.f32.partialorder %v917_v10, 8.507059e+37  ;;  %v2140_v57 = vld [vmem:[#allocation11 + $0x6c] sm:$0xf]  ;;  %v1995_v23 = vld [vmem:[#allocation11 + $0x18] sm:$0xf0] }
 0x1a7   :  { %1771 = vmatpush.bf16.msrb.mxu0 %v2078_v30  ;;  %v2136_v30 = vld [vmem:[#allocation11 + $0x4c] sm:$0xf] }
 0x1a9   :  { %981 = vadd.xlane.f32.xlu2 %v3270_v15 }
 0x1aa   :  { %v3276_v20 = vpop.eup %2283 }
 0x1ab   :  { %v909_v4 = vmul.f32 %v3276_v20, %v3273_v56  ;;  %vm914_vm15 = vweird.f32 %v3276_v20  ;;  %v2059_v56 = vld [vmem:[#allocation11 + $0x98] sm:$0xf0] }
 0x1ac   :  { %vm3294_vm0 = vmor %vm913_vm14, %vm914_vm15  ;;  %v2062_v50 = vor.u32 %v2144_v45, %v2059_v56  ;;  %v2003_v45 = vld [vmem:[#allocation11 + $0x30] sm:$0xf0]  ;;  %v2009_v56 = vld [vmem:[#allocation11 + $0x28] sm:$0xf] }
 0x1ad   :  { %v910_v27 = vsub.f32 1.0, %v909_v4 }
 0x1ae   :  { %1772 = vmatpush.bf16.msrb.mxu0 %v2062_v50  ;;  %v2134_v50 = vld [vmem:[#allocation11 + $0x34] sm:$0xf0] }
 0x1af   :  { %v911_v37 = vmul.f32 %v3276_v20, %v910_v27  ;;  %v2054_v27 = vor.u32 %v2143_v14, %v2051_v61  ;;  %v2030_v14 = vor.u32 %v2136_v30, %v2027_v3 }
 0x1b1   :  { %v912_v4 = vadd.f32 %v3276_v20, %v911_v37  ;;  %1674 = vmatpush.bf16.msrb.mxu2 %v2054_v27  ;;  %v2041_v37 = vld [vmem:[#allocation11 + $0x68] sm:$0xf]  ;;  %v2002_v27 = vor.u32 %v2133_v19, %v2001_v16  ;;  %v3341_v16 = vld [vmem:[#allocation8] ss:$0 sm:$0xff] }
 0x1b3   :  { %v916_v11 = vsel %vm3294_vm0, %v3276_v20, %v912_v4  ;;  %v2034_v20 = vor.u32 %v2141_v34, %v2033_v25  ;;  %v2022_v4 = vor.u32 %v2135_v24, %v2019_v5  ;;  %v1998_v5 = vor.u32 %v2128_v49, %v1995_v23 }
 0x1b4   :  { %v921_v58 = vsel %vm918_vm1, %v920_v47, %v916_v11 }
 0x1b5   :  { %1626 = vmatpush.bf16.msrb.mxu1 %v2034_v20  ;;  %v922_v44 = vmul.f32 %v921_v58, %v897_v60  ;;  %v2132_v60 = vld [vmem:[#allocation11 + $0x2c] sm:$0xf]  ;;  %v2011_v58 = vld [vmem:[#allocation11 + $0x38] sm:$0xf0]  ;;  %v1985_v20 = vld [vmem:[#allocation11] sm:$0xf] }
 0x1b7   :  { %v1950_v61 = vclamps-f32 %v922_v44, 1.0 }
 0x1b9   :  { %1627 = vmatpush.bf16.msrb.mxu1 %v2018_v28 }
 0x1bd   :  { %1628 = vmatpush.bf16.msrb.mxu1 %v2002_v27 }
 0x1e0   :  { %v1045_v6 = vpop.xlane.xlu0 %1044 }
 0x1e1   :  { %v1076_v55 = vmul.f32 %v1045_v6, %v3014_v52  ;;  %v2139_v6 = vld [vmem:[#allocation11 + $0x64] sm:$0xf] }
 0x1e2   :  { %v2038_v62 = vor.u32 %v2139_v6, %v2035_v31  ;;  %v2010_v6 = vor.u32 %v2134_v50, %v2009_v56  ;;  %v2129_v31 = vld [vmem:[#allocation11 + $0xc] sm:$0xf0] }
 0x1e3   :  { %v3286_v12 = vadd.f32 1e-12, %v1076_v55  ;;  %v2142_v55 = vld [vmem:[#allocation11 + $0x74] sm:$0xf0] }
 0x1e4   :  { %v2042_v10 = vor.u32 %v2142_v55, %v2041_v37  ;;  %1675 = vmatpush.bf16.msrb.mxu2 %v2038_v62  ;;  %v2127_v37 = vld [vmem:[#allocation11 + $0x4] sm:$0xf]  ;;  %v1986_v55 = vor.u32 %v2129_v31, %v1985_v20  ;;  %v1987_v62 = vld [vmem:[#allocation11 + $0x10] sm:$0xf0] }
 0x1e5   :  { %2285 = vrsqrt.f32 %v3286_v12  ;;  %vm1114_vm3 = vweird.f32 %v3286_v12 }
 0x1e6   :  { %1724 = vmatpush.bf16.msrb.mxu3 %v2042_v10  ;;  %v1993_v10 = vld [vmem:[#allocation11 + $0x8] sm:$0xf]  ;;  %1629 = vmatpush.bf16.msrb.mxu1 %v1986_v55 }
 0x1e8   :  { %v972_v22 = vpop.xlane.xlu0 %971  ;;  %1676 = vmatpush.bf16.msrb.mxu2 %v2022_v4 }
 0x1e9   :  { %v1003_v1 = vmul.f32 %v3014_v52, %v972_v22 }
 0x1ea   :  { %1725 = vmatpush.bf16.msrb.mxu3 %v2026_v42 }
 0x1eb   :  { %v3303_v53 = vpop.eup %2285  ;;  %v3306_v39 = vsub.f32 %v3083_v59, %v1003_v1  ;;  %v2046_v59 = vor.u32 %v2140_v57, %v2043_v35  ;;  %v2006_v1 = vor.u32 %v2131_v29, %v2003_v45  ;;  %v2130_v57 = vld [vmem:[#allocation11 + $0x14] sm:$0xf0]  ;;  %v261_v35 = vmul.f32 0.5, %v3253_v7 }
 0x1ec   :  { %v1109_v48 = vmul.f32 %v3303_v53, %v3286_v12  ;;  %v1994_v44 = vor.u32 %v2130_v57, %v1993_v10  ;;  %vm1115_vm2 = vweird.f32 %v3303_v53 }
 0x1ed   :  { %v1035_v13 = vmul.f32 %v3306_v39, %v3306_v39  ;;  %1773 = vmatpush.bf16.msrb.mxu0 %v2046_v59  ;;  %1677 = vmatpush.bf16.msrb.mxu2 %v2006_v1  ;;  %v1990_v59 = vor.u32 %v2127_v37, %v1987_v62  ;;  %vm1116_vm4 = vmor %vm1114_vm3, %vm1115_vm2 }
 0x1ee   :  { %v1110_v47 = vmul.f32 %v3303_v53, %v1109_v48  ;;  %1726 = vmatpush.bf16.msrb.mxu3 %v2010_v6 }
 0x1ef   :  { %1058 = vadd.xlane.f32.xlu1 %v1035_v13  ;;  %v940_v13 = vadd.f32 1.0, %v1950_v61 }
 0x1f0   :  { %v974_v26 = vpop.xlane.xlu0 %973  ;;  %v1111_v25 = vmul.f32 0.5, %v1110_v47 }
 0x1f1   :  { %v1047_v0 = vpop.xlane.xlu1 %1046  ;;  %v1004_v54 = vmul.f32 %v3014_v52, %v974_v26  ;;  %1774 = vmatpush.bf16.msrb.mxu0 %v2030_v14  ;;  %1678 = vmatpush.bf16.msrb.mxu2 %v1990_v59  ;;  %v3328_v26 = vmul.f32 %v940_v13, %v261_v35 }
 0x1f2   :  { %v1077_v32 = vmul.f32 %v1047_v0, %v3014_v52  ;;  %v1112_v24 = vsub.f32 1.5, %v1111_v25  ;;  %1727 = vmatpush.bf16.msrb.mxu3 %v1994_v44 }
 0x1f3   :  { %v3316_v22 = vsub.f32 %v3095_v38, %v1004_v54  ;;  %v2014_v38 = vor.u32 %v2132_v60, %v2011_v58 }
 0x1f4   :  { %v3318_v11 = vadd.f32 1e-12, %v1077_v32  ;;  %v1113_v4 = vmul.f32 %v3303_v53, %v1112_v24 }
 0x1f5   :  { %v1036_v34 = vmul.f32 %v3316_v22, %v3316_v22  ;;  %1775 = vmatpush.bf16.msrb.mxu0 %v2014_v38 }
 0x1f6   :  { %2287 = vrsqrt.f32 %v3318_v11  ;;  %v1117_v54 = vsel %vm1116_vm4, %v3303_v53, %v1113_v4  ;;  %vm1124_vm6 = vweird.f32 %v3318_v11 }
 0x1f7   :  { %1060 = vadd.xlane.f32.xlu1 %v1036_v34  ;;  %v1268_v19 = vmul.f32 %v1117_v54, %v3032_v51  ;;  %v3352_v51 = vld [vmem:[#allocation9] ss:$0 sm:$0xff] }
 0x1f8   :  { %v1055_v48 = vpop.xlane.xlu0 %1054 }
 0x1f9   :  { %v1081_v28 = vmul.f32 %v1055_v48, %v3014_v52  ;;  %1776 = vmatpush.bf16.msrb.mxu0 %v1998_v5  ;;  %v1288_v34 = vmul.f32 %v3341_v16, %v1268_v19 }
 0x1fb   :  { %v3325_v9 = vadd.f32 1e-12, %v1081_v28 }
 0x1fc   :  { %v2288_v40 = vpop.eup %2287  ;;  %v1049_v7 = vpop.xlane.xlu1 %1048 }
 0x1fd   :  { %v1119_v42 = vmul.f32 %v2288_v40, %v3318_v11  ;;  %v1078_v30 = vmul.f32 %v1049_v7, %v3014_v52  ;;  %2289 = vrsqrt.f32 %v3325_v9  ;;  %vm1125_vm5 = vweird.f32 %v2288_v40 }
 0x1fe   :  { %vm1126_vm7 = vmor %vm1124_vm6, %vm1125_vm5  ;;  %vm1164_vm13 = vweird.f32 %v3325_v9 }
 0x1ff   :  { %v1120_v3 = vmul.f32 %v2288_v40, %v1119_v42  ;;  %v1094_v47 = vadd.f32 1e-12, %v1078_v30  ;;  %987 = vadd.xlane.f32.xlu1 %v3328_v26 }
 0x200   :  { %v3336_v0 = vpop.xlane.xlu0 %1056 }
 0x201   :  { %v1121_v14 = vmul.f32 0.5, %v1120_v3  ;;  %2291 = vrsqrt.f32 %v1094_v47  ;;  %vm1134_vm9 = vweird.f32 %v1094_v47 }
 0x203   :  { %v3339_v32 = vpop.eup %2289  ;;  %v1122_v61 = vsub.f32 1.5, %v1121_v14 }
 0x204   :  { %v1051_v12 = vpop.xlane.xlu2 %1050  ;;  %v976_v27 = vpop.xlane.xlu1 %975  ;;  %v1159_v53 = vmul.f32 %v3339_v32, %v3325_v9  ;;  %vm1165_vm11 = vweird.f32 %v3339_v32 }
 0x205   :  { %v1123_v29 = vmul.f32 %v2288_v40, %v1122_v61  ;;  %v1079_v45 = vmul.f32 %v1051_v12, %v3014_v52  ;;  %v1005_v56 = vmul.f32 %v3014_v52, %v976_v27  ;;  %vm3387_vm15 = vmor %vm1164_vm13, %vm1165_vm11 }
 0x206   :  { %v1160_v31 = vmul.f32 %v3339_v32, %v1159_v53 }
 0x207   :  { %v2292_v1 = vpop.eup %2291  ;;  %v1127_v50 = vsel %vm1126_vm7, %v2288_v40, %v1123_v29  ;;  %v1095_v60 = vadd.f32 1e-12, %v1079_v45  ;;  %v3350_v25 = vsub.f32 %v3218_v43, %v1005_v56  ;;  %v1308_v43 = vadd.f32 %v3352_v51, %v1288_v34 }
 0x208   :  { %v1269_v11 = vmul.f32 %v1127_v50, %v3112_v18  ;;  %v1129_v6 = vmul.f32 %v2292_v1, %v1094_v47  ;;  %v984_v37 = vpop.xlane.xlu0 %983  ;;  %v1161_v59 = vmul.f32 0.5, %v1160_v31  ;;  %vm1135_vm8 = vweird.f32 %v2292_v1 }
 0x209   :  { %2293 = vrsqrt.f32 %v1095_v60  ;;  %v1037_v58 = vmul.f32 %v3350_v25, %v3350_v25  ;;  %v1009_v24 = vmul.f32 %v3014_v52, %v984_v37  ;;  %vm1136_vm10 = vmor %vm1134_vm9, %vm1135_vm8  ;;  %vm1144_vm14 = vweird.f32 %v1095_v60 }
 0x20a   :  { %v1289_v38 = vmul.f32 %v3341_v16, %v1269_v11  ;;  %v1130_v20 = vmul.f32 %v2292_v1, %v1129_v6  ;;  %v1162_v4 = vsub.f32 1.5, %v1161_v59 }
 0x20b   :  { %1062 = vadd.xlane.f32.xlu2 %v1037_v58  ;;  %v3374_v42 = vsub.f32 %v3235_v17, %v1009_v24 }
 0x20c   :  { %v1309_v55 = vadd.f32 %v3352_v51, %v1289_v38  ;;  %v1131_v62 = vmul.f32 0.5, %v1130_v20  ;;  %v1053_v10 = vpop.xlane.xlu2 %1052  ;;  %v978_v57 = vpop.xlane.xlu1 %977  ;;  %v1163_v19 = vmul.f32 %v3339_v32, %v1162_v4 }
 0x20d   :  { %v1080_v18 = vmul.f32 %v1053_v10, %v3014_v52  ;;  %v1006_v35 = vmul.f32 %v3014_v52, %v978_v57  ;;  %v1041_v27 = vmul.f32 %v3374_v42, %v3374_v42 }
 0x20e   :  { %v2162_v48 = vpack.c.bf16 %v1309_v55, %v1308_v43  ;;  %v1132_v13 = vsub.f32 1.5, %v1131_v62 }
 0x20f   :  { %v2294_v44 = vpop.eup %2293  ;;  %v3364_v49 = vadd.f32 1e-12, %v1080_v18  ;;  %v3367_v23 = vsub.f32 %v3245_v63, %v1006_v35 }
 0x210   :  { %2163 = vst [vmem:[#allocation2 + $0x30] sm:$0xff] %v2162_v48   ;;  %v1133_v28 = vmul.f32 %v2292_v1, %v1132_v13  ;;  %v1139_v5 = vmul.f32 %v2294_v44, %v1095_v60  ;;  %v986_v54 = vpop.xlane.xlu0 %985  ;;  %vm1145_vm12 = vweird.f32 %v2294_v44 }
 0x211   :  { %2295 = vrsqrt.f32 %v3364_v49  ;;  %v1038_v40 = vmul.f32 %v3367_v23, %v3367_v23  ;;  %v1010_v29 = vmul.f32 %v3014_v52, %v986_v54  ;;  %vm1146_vm0 = vmor %vm1144_vm14, %vm1145_vm12  ;;  %vm1154_vm2 = vweird.f32 %v3364_v49 }
 0x212   :  { %v1140_v7 = vmul.f32 %v2294_v44, %v1139_v5  ;;  %v1137_v63 = vsel %vm1136_vm10, %v2292_v1, %v1133_v28  ;;  %v1167_v1 = vsel %vm3387_vm15, %v3339_v32, %v1163_v19 }
 0x213   :  { %1064 = vadd.xlane.f32.xlu2 %v1038_v40  ;;  %v1270_v12 = vmul.f32 %v1137_v63, %v3178_v36  ;;  %v3400_v11 = vsub.f32 %v3257_v2, %v1010_v29  ;;  %v1273_v32 = vmul.f32 %v1167_v1, %v3147_v33 }
 0x214   :  { %v1141_v30 = vmul.f32 0.5, %v1140_v7  ;;  %v980_v3 = vpop.xlane.xlu2 %979 }
 0x215   :  { %v1007_v14 = vmul.f32 %v3014_v52, %v980_v3  ;;  %v1290_v60 = vmul.f32 %v3341_v16, %v1270_v12  ;;  %v1042_v2 = vmul.f32 %v3400_v11, %v3400_v11  ;;  %v1293_v57 = vmul.f32 %v3341_v16, %v1273_v32 }
 0x216   :  { %v1142_v61 = vsub.f32 1.5, %v1141_v30 }
 0x217   :  { %v2296_v47 = vpop.eup %2295  ;;  %v3382_v17 = vsub.f32 %v3263_v46, %v1007_v14  ;;  %v2119_v45 = vld [vmem:[#allocation2 + $0x30] sm:$0xff]  ;;  %v1310_v37 = vadd.f32 %v3352_v51, %v1290_v60  ;;  %v1313_v35 = vadd.f32 %v3352_v51, %v1293_v57 }
 0x218   :  { %v1143_v56 = vmul.f32 %v2294_v44, %v1142_v61  ;;  %v1149_v9 = vmul.f32 %v2296_v47, %v3364_v49  ;;  %1630 = vmatmul.bf16.vlgmr.msrb.gmra.mxu1 %v2119_v45  ;;  %1679 = vmatmul.bf16.vlgmr.msrb.gmra.mxu2 %v2119_v45  ;;  %vm1155_vm1 = vweird.f32 %v2296_v47 }
 0x219   :  { %v1039_v36 = vmul.f32 %v3382_v17, %v3382_v17  ;;  %1728 = vmatmul.bf16.vlgmr.msrb.gmra.mxu3 %v2119_v45  ;;  %1777 = vmatmul.bf16.vlgmr.msrb.gmra.mxu0 %v2119_v45  ;;  %vm1156_vm3 = vmor %vm1154_vm2, %vm1155_vm1 }
 0x21a   :  { %v1147_v46 = vsel %vm1146_vm0, %v2294_v44, %v1143_v56  ;;  %v1150_v50 = vmul.f32 %v2296_v47, %v1149_v9 }
 0x21b   :  { %v1271_v34 = vmul.f32 %v1147_v46, %v3215_v21  ;;  %1066 = vadd.xlane.f32.xlu0 %v1039_v36  ;;  %1070 = vadd.xlane.f32.xlu2 %v1041_v27 }
 0x21c   :  { %v1151_v6 = vmul.f32 0.5, %v1150_v50  ;;  %v982_v58 = vpop.xlane.xlu2 %981 }
 0x21d   :  { %v1291_v38 = vmul.f32 %v3341_v16, %v1271_v34  ;;  %v1008_v20 = vmul.f32 %v3014_v52, %v982_v58 }
 0x21e   :  { %v1152_v31 = vsub.f32 1.5, %v1151_v6 }
 0x21f   :  { %v1311_v43 = vadd.f32 %v3352_v51, %v1291_v38  ;;  %v3408_v21 = vsub.f32 %v3270_v15, %v1008_v20 }
 0x220   :  { %v1153_v55 = vmul.f32 %v2296_v47, %v1152_v31 }
 0x221   :  { %v2167_v62 = vpack.c.bf16 %v1311_v43, %v1310_v37  ;;  %v1040_v33 = vmul.f32 %v3408_v21, %v3408_v21 }
 0x222   :  { %v1157_v10 = vsel %vm1156_vm3, %v2296_v47, %v1153_v55 }
 0x223   :  { %2199 = vst [vmem:[#allocation2] sm:$0xff] %v2167_v62   ;;  %v1272_v18 = vmul.f32 %v1157_v10, %v3238_v8  ;;  %1068 = vadd.xlane.f32.xlu1 %v1040_v33  ;;  %1072 = vadd.xlane.f32.xlu0 %v1042_v2  ;;  %v1082_v8 = vmul.f32 %v3336_v0, %v3014_v52 }
 0x225   :  { %v1292_v15 = vmul.f32 %v3341_v16, %v1272_v18  ;;  %v1098_v49 = vadd.f32 1e-12, %v1082_v8 }
 0x227   :  { %v1312_v48 = vadd.f32 %v3352_v51, %v1292_v15  ;;  %2297 = vrsqrt.f32 %v1098_v49  ;;  %vm1174_vm5 = vweird.f32 %v1098_v49 }
 0x229   :  { %v2172_v13 = vpack.c.bf16 %v1313_v35, %v1312_v48 }
 0x22a   :  { %v2120_v59 = vld [vmem:[#allocation2] sm:$0xff] }
 0x22b   :  { %2200 = vst [vmem:[#allocation2 + $0x18] sm:$0xff] %v2172_v13   ;;  %1635 = vmatmul.bf16.gmra.mxu1 %v2120_v59  ;;  %1684 = vmatmul.bf16.gmra.mxu2 %v2120_v59 }
 0x22c   :  { %1733 = vmatmul.bf16.gmra.mxu3 %v2120_v59  ;;  %1782 = vmatmul.bf16.gmra.mxu0 %v2120_v59 }
 0x22d   :  { %v2298_v24 = vpop.eup %2297 }
 0x22e   :  { %v1169_v28 = vmul.f32 %v2298_v24, %v1098_v49  ;;  %vm1175_vm4 = vweird.f32 %v2298_v24 }
 0x22f   :  { %vm1176_vm6 = vmor %vm1174_vm5, %vm1175_vm4 }
 0x230   :  { %v1170_v5 = vmul.f32 %v2298_v24, %v1169_v28 }
 0x232   :  { %v2121_v44 = vld [vmem:[#allocation2 + $0x18] sm:$0xff]  ;;  %v1171_v63 = vmul.f32 0.5, %v1170_v5 }
 0x234   :  { %v1172_v30 = vsub.f32 1.5, %v1171_v63 }
 0x236   :  { %v1173_v19 = vmul.f32 %v2298_v24, %v1172_v30 }
 0x238   :  { %v1177_v12 = vsel %vm1176_vm6, %v2298_v24, %v1173_v19  ;;  %v1404_v24 = vld [vmem:[%s3590_s6] sm:$0xf]  ;;  %s2483_s6 = smov [#allocation12]  }
 0x239   :  { %v1274_v53 = vmul.f32 %v1177_v12, %v3186_v41  ;;  %v3453_v30 = vperm.slane %v1404_v24, 0  ;;  %s1886_s9 = sshll.u32 %s2483_s6, 4  ;;  %s1887_s9 = int_to_ptr.vmem [resolvable:$true] %s1886_s9 }
 0x23b   :  { %1640 = vmatmul.bf16.gmra.mxu1 %v2121_v44  ;;  %1689 = vmatmul.bf16.gmra.mxu2 %v2121_v44  ;;  %v1294_v60 = vmul.f32 %v3341_v16, %v1274_v53 }
 0x23c   :  { %1738 = vmatmul.bf16.gmra.mxu3 %v2121_v44  ;;  %1787 = vmatmul.bf16.gmra.mxu0 %v2121_v44 }
 0x23d   :  { %v1314_v41 = vadd.f32 %v3352_v51, %v1294_v60 }
 0x262   :  { %v1059_v40 = vpop.xlane.xlu1 %1058 }
 0x263   :  { %v1083_v7 = vmul.f32 %v1059_v40, %v3014_v52 }
 0x265   :  { %v1099_v4 = vadd.f32 1e-12, %v1083_v7 }
 0x267   :  { %2299 = vrsqrt.f32 %v1099_v4  ;;  %vm1184_vm8 = vweird.f32 %v1099_v4 }
 0x26a   :  { %v1061_v3 = vpop.xlane.xlu1 %1060 }
 0x26b   :  { %v1084_v54 = vmul.f32 %v1061_v3, %v3014_v52 }
 0x26d   :  { %v2300_v14 = vpop.eup %2299  ;;  %v1100_v61 = vadd.f32 1e-12, %v1084_v54 }
 0x26e   :  { %v1179_v0 = vmul.f32 %v2300_v14, %v1099_v4  ;;  %vm1185_vm7 = vweird.f32 %v2300_v14 }
 0x26f   :  { %2301 = vrsqrt.f32 %v1100_v61  ;;  %vm1186_vm9 = vmor %vm1184_vm8, %vm1185_vm7  ;;  %vm1194_vm11 = vweird.f32 %v1100_v61 }
 0x270   :  { %v1180_v47 = vmul.f32 %v2300_v14, %v1179_v0 }
 0x272   :  { %v1181_v27 = vmul.f32 0.5, %v1180_v47  ;;  %v988_v29 = vpop.xlane.xlu1 %987 }
 0x273   :  { %v1011_v45 = vmul.f32 %v3014_v52, %v988_v29 }
 0x274   :  { %v1182_v56 = vsub.f32 1.5, %v1181_v27 }
 0x275   :  { %v3427_v9 = vsub.f32 %v3328_v26, %v1011_v45  ;;  %v2302_v46 = vpop.eup %2301 }
 0x276   :  { %v1183_v36 = vmul.f32 %v2300_v14, %v1182_v56  ;;  %v1189_v6 = vmul.f32 %v2302_v46, %v1100_v61  ;;  %vm1195_vm10 = vweird.f32 %v2302_v46 }
 0x277   :  { %v1043_v1 = vmul.f32 %v3427_v9, %v3427_v9  ;;  %vm1196_vm12 = vmor %vm1194_vm11, %vm1195_vm10 }
 0x278   :  { %v1187_v50 = vsel %vm1186_vm9, %v2300_v14, %v1183_v36  ;;  %v1190_v38 = vmul.f32 %v2302_v46, %v1189_v6  ;;  %v3456_v14 = vperm.slane %v1404_v24, 3 }
 0x279   :  { %v1275_v34 = vmul.f32 %v1187_v50, %v3306_v39  ;;  %1074 = vadd.xlane.f32.xlu1 %v1043_v1  ;;  %v3470_v50 = vperm.slane %v1404_v24, 1 }
 0x27a   :  { %v1191_v43 = vmul.f32 0.5, %v1190_v38 }
 0x27b   :  { %v1295_v58 = vmul.f32 %v3341_v16, %v1275_v34 }
 0x27c   :  { %v1192_v2 = vsub.f32 1.5, %v1191_v43 }
 0x27d   :  { %v1315_v26 = vadd.f32 %v3352_v51, %v1295_v58  ;;  %v3474_v58 = vperm.slane %v1404_v24, 2 }
 0x27e   :  { %v1063_v20 = vpop.xlane.xlu2 %1062  ;;  %v1193_v57 = vmul.f32 %v2302_v46, %v1192_v2 }
 0x27f   :  { %v2177_v32 = vpack.c.bf16 %v1315_v26, %v1314_v41  ;;  %v1085_v31 = vmul.f32 %v1063_v20, %v3014_v52 }
 0x280   :  { %v1197_v35 = vsel %vm1196_vm12, %v2302_v46, %v1193_v57 }
 0x281   :  { %2201 = vst [vmem:[#allocation2 + $0x10] sm:$0xff] %v2177_v32   ;;  %v1101_v37 = vadd.f32 1e-12, %v1085_v31  ;;  %v1276_v5 = vmul.f32 %v1197_v35, %v3316_v22 }
 0x283   :  { %2303 = vrsqrt.f32 %v1101_v37  ;;  %vm1204_vm14 = vweird.f32 %v1101_v37  ;;  %v1296_v22 = vmul.f32 %v3341_v16, %v1276_v5 }
 0x285   :  { %v1316_v46 = vadd.f32 %v3352_v51, %v1296_v22 }
 0x286   :  { %v1065_v55 = vpop.xlane.xlu2 %1064 }
 0x287   :  { %v1086_v39 = vmul.f32 %v1065_v55, %v3014_v52 }
 0x288   :  { %v2122_v62 = vld [vmem:[#allocation2 + $0x10] sm:$0xff] }
 0x289   :  { %v2304_v33 = vpop.eup %2303  ;;  %v3438_v10 = vadd.f32 1e-12, %v1086_v39  ;;  %1645 = vmatmul.bf16.gmra.mxu1 %v2122_v62  ;;  %1694 = vmatmul.bf16.gmra.mxu2 %v2122_v62 }
 0x28a   :  { %v1199_v18 = vmul.f32 %v2304_v33, %v1101_v37  ;;  %1743 = vmatmul.bf16.gmra.mxu3 %v2122_v62  ;;  %1792 = vmatmul.bf16.gmra.mxu0 %v2122_v62  ;;  %vm1205_vm13 = vweird.f32 %v2304_v33 }
 0x28b   :  { %2305 = vrsqrt.f32 %v3438_v10  ;;  %vm1206_vm15 = vmor %vm1204_vm14, %vm1205_vm13  ;;  %vm1214_vm1 = vweird.f32 %v3438_v10 }
 0x28c   :  { %v1200_v15 = vmul.f32 %v2304_v33, %v1199_v18 }
 0x28e   :  { %v1201_v48 = vmul.f32 0.5, %v1200_v15  ;;  %v1071_v13 = vpop.xlane.xlu2 %1070  ;;  %v1067_v59 = vpop.xlane.xlu0 %1066 }
 0x28f   :  { %v1089_v44 = vmul.f32 %v1071_v13, %v3014_v52  ;;  %v1087_v8 = vmul.f32 %v1067_v59, %v3014_v52 }
 0x290   :  { %v1202_v49 = vsub.f32 1.5, %v1201_v48 }
 0x291   :  { %v2306_v28 = vpop.eup %2305  ;;  %v3447_v40 = vadd.f32 1e-12, %v1089_v44  ;;  %v3449_v7 = vadd.f32 1e-12, %v1087_v8 }
 0x292   :  { %v1203_v4 = vmul.f32 %v2304_v33, %v1202_v49  ;;  %v1209_v63 = vmul.f32 %v2306_v28, %v3438_v10  ;;  %vm1215_vm0 = vweird.f32 %v2306_v28 }
 0x293   :  { %2307 = vrsqrt.f32 %v3447_v40  ;;  %vm3480_vm2 = vmor %vm1214_vm1, %vm1215_vm0  ;;  %vm1224_vm5 = vweird.f32 %v3449_v7  ;;  %vm1244_vm6 = vweird.f32 %v3447_v40 }
 0x294   :  { %v1207_v3 = vsel %vm1206_vm15, %v2304_v33, %v1203_v4  ;;  %v1210_v54 = vmul.f32 %v2306_v28, %v1209_v63  ;;  %2309 = vrsqrt.f32 %v3449_v7 }
 0x295   :  { %v1277_v61 = vmul.f32 %v1207_v3, %v3350_v25  ;;  %v1631_v27 = vpop.f32.mrf.mxu1 }
 0x296   :  { %v1211_v19 = vmul.f32 0.5, %v1210_v54  ;;  %v1069_v0 = vpop.xlane.xlu1 %1068  ;;  %v1778_v29 = vpop.f32.mrf.mxu0  ;;  %v1632_v56 = vadd.f32 %v1631_v27, %v3453_v30 }
 0x297   :  { %v1297_v47 = vmul.f32 %v3341_v16, %v1277_v61  ;;  %v1088_v12 = vmul.f32 %v1069_v0, %v3014_v52  ;;  %v1779_v53 = vadd.f32 %v1778_v29, %v3456_v14 }
 0x298   :  { %v1212_v45 = vsub.f32 1.5, %v1211_v19  ;;  %1818 = vst [vmem:[#allocation12] sm:$0xff] %v1632_v56 }
 0x299   :  { %v3464_v36 = vpop.eup %2307  ;;  %v1317_v1 = vadd.f32 %v3352_v51, %v1297_v47  ;;  %v3468_v25 = vadd.f32 1e-12, %v1088_v12  ;;  %1821 = vst [vmem:[#allocation12 + $0x18] sm:$0xff] %v1779_v53 }
 0x29a   :  { %v2310_v60 = vpop.eup %2309  ;;  %v1213_v34 = vmul.f32 %v2306_v28, %v1212_v45  ;;  %v1239_v6 = vmul.f32 %v3464_v36, %v3447_v40  ;;  %vm1245_vm4 = vweird.f32 %v3464_v36 }
 0x29b   :  { %v2182_v41 = vpack.c.bf16 %v1317_v1, %v1316_v46  ;;  %v1219_v26 = vmul.f32 %v2310_v60, %v3449_v7  ;;  %2311 = vrsqrt.f32 %v3468_v25  ;;  %v1680_v20 = vpop.f32.mrf.mxu2  ;;  %vm1225_vm3 = vweird.f32 %v2310_v60  ;;  %vm3497_vm8 = vmor %vm1244_vm6, %vm1245_vm4 }
 0x29c   :  { %v1240_v38 = vmul.f32 %v3464_v36, %v1239_v6  ;;  %v1681_v37 = vadd.f32 %v1680_v20, %v3470_v50  ;;  %v1729_v43 = vpop.f32.mrf.mxu3  ;;  %v1217_v2 = vsel %vm3480_vm2, %v2306_v28, %v1213_v34  ;;  %vm1226_vm7 = vmor %vm1224_vm5, %vm1225_vm3  ;;  %vm1234_vm10 = vweird.f32 %v3468_v25 }
 0x29d   :  { %2202 = vst [vmem:[#allocation2 + $0x8] sm:$0xff] %v2182_v41   ;;  %v1220_v31 = vmul.f32 %v2310_v60, %v1219_v26  ;;  %v1730_v39 = vadd.f32 %v1729_v43, %v3474_v58  ;;  %v1633_v33 = vpop.f32.mrf.mxu1  ;;  %v1278_v48 = vmul.f32 %v1217_v2, %v3367_v23 }
 0x29e   :  { %v1241_v55 = vmul.f32 0.5, %v1240_v38  ;;  %1819 = vst [vmem:[#allocation12 + $0x8] sm:$0xff] %v1681_v37  ;;  %v1780_v10 = vpop.f32.mrf.mxu0  ;;  %v1634_v18 = vadd.f32 %v1633_v33, %v3453_v30 }
 0x29f   :  { %v1221_v62 = vmul.f32 0.5, %v1220_v31  ;;  %1820 = vst [vmem:[#allocation12 + $0x10] sm:$0xff] %v1730_v39  ;;  %v1781_v15 = vadd.f32 %v1780_v10, %v3456_v14  ;;  %v1298_v23 = vmul.f32 %v3341_v16, %v1278_v48 }
 0x2a0   :  { %v1242_v57 = vsub.f32 1.5, %v1241_v55  ;;  %1822 = vst [vmem:[#allocation12 + $0x20] sm:$0xff] %v1634_v18 }
 0x2a1   :  { %v2312_v35 = vpop.eup %2311  ;;  %v1222_v13 = vsub.f32 1.5, %v1221_v62  ;;  %1825 = vst [vmem:[#allocation12 + $0x38] sm:$0xff] %v1781_v15 }
 0x2a2   :  { %v1243_v59 = vmul.f32 %v3464_v36, %v1242_v57  ;;  %v1229_v44 = vmul.f32 %v2312_v35, %v3468_v25  ;;  %vm1235_vm9 = vweird.f32 %v2312_v35 }
 0x2a3   :  { %v1223_v8 = vmul.f32 %v2310_v60, %v1222_v13  ;;  %v1682_v28 = vpop.f32.mrf.mxu2  ;;  %vm1236_vm11 = vmor %vm1234_vm10, %vm1235_vm9 }
 0x2a4   :  { %v1230_v49 = vmul.f32 %v2312_v35, %v1229_v44  ;;  %v2123_v24 = vld [vmem:[#allocation2 + $0x8] sm:$0xff]  ;;  %v1683_v63 = vadd.f32 %v1682_v28, %v3470_v50  ;;  %v1731_v3 = vpop.f32.mrf.mxu3  ;;  %v1247_v7 = vsel %vm3497_vm8, %v3464_v36, %v1243_v59 }
 0x2a5   :  { %v1227_v4 = vsel %vm1226_vm7, %v2310_v60, %v1223_v8  ;;  %1650 = vmatmul.bf16.gmra.mxu1 %v2123_v24  ;;  %1699 = vmatmul.bf16.gmra.mxu2 %v2123_v24  ;;  %v1732_v22 = vadd.f32 %v1731_v3, %v3474_v58  ;;  %v1281_v0 = vmul.f32 %v1247_v7, %v3374_v42 }
 0x2a6   :  { %v1279_v40 = vmul.f32 %v1227_v4, %v3382_v17  ;;  %v1231_v54 = vmul.f32 0.5, %v1230_v49  ;;  %1748 = vmatmul.bf16.gmra.mxu3 %v2123_v24  ;;  %1797 = vmatmul.bf16.gmra.mxu0 %v2123_v24  ;;  %1823 = vst [vmem:[#allocation12 + $0x28] sm:$0xff] %v1683_v63  ;;  %v1318_v17 = vadd.f32 %v3352_v51, %v1298_v23  ;;  %v1073_v4 = vpop.xlane.xlu0 %1072 }
 0x2a7   :  { %1824 = vst [vmem:[#allocation12 + $0x30] sm:$0xff] %v1732_v22  ;;  %v1301_v46 = vmul.f32 %v3341_v16, %v1281_v0  ;;  %v1090_v63 = vmul.f32 %v1073_v4, %v3014_v52 }
 0x2a8   :  { %v1299_v61 = vmul.f32 %v3341_v16, %v1279_v40  ;;  %v1232_v19 = vsub.f32 1.5, %v1231_v54  ;;  %v1636_v47 = vpop.f32.mrf.mxu1 }
 0x2a9   :  { %v1637_v29 = vadd.f32 %v1636_v47, %v3453_v30  ;;  %v1783_v45 = vpop.f32.mrf.mxu0  ;;  %v1321_v6 = vadd.f32 %v3352_v51, %v1301_v46  ;;  %v1106_v3 = vadd.f32 1e-12, %v1090_v63 }
 0x2aa   :  { %v1319_v12 = vadd.f32 %v3352_v51, %v1299_v61  ;;  %v1233_v27 = vmul.f32 %v2312_v35, %v1232_v19  ;;  %v1784_v56 = vadd.f32 %v1783_v45, %v3456_v14 }
 0x2ab   :  { %1826 = vst [vmem:[#allocation12 + $0x40] sm:$0xff] %v1637_v29  ;;  %2313 = vrsqrt.f32 %v1106_v3  ;;  %vm1254_vm13 = vweird.f32 %v1106_v3 }
 0x2ac   :  { %v2187_v53 = vpack.c.bf16 %v1319_v12, %v1318_v17  ;;  %v1237_v36 = vsel %vm1236_vm11, %v2312_v35, %v1233_v27  ;;  %1829 = vst [vmem:[#allocation12 + $0x58] sm:$0xff] %v1784_v56 }
 0x2ad   :  { %v1280_v42 = vmul.f32 %v1237_v36, %v3408_v21 }
 0x2ae   :  { %2203 = vst [vmem:[#allocation2 + $0x20] sm:$0xff] %v2187_v53   ;;  %v1685_v25 = vpop.f32.mrf.mxu2 }
 0x2af   :  { %v1300_v1 = vmul.f32 %v3341_v16, %v1280_v42  ;;  %v1686_v60 = vadd.f32 %v1685_v25, %v3470_v50  ;;  %v1734_v34 = vpop.f32.mrf.mxu3 }
 0x2b0   :  { %v1735_v26 = vadd.f32 %v1734_v34, %v3474_v58  ;;  %v1638_v38 = vpop.f32.mrf.mxu1 }
 0x2b1   :  { %v1320_v41 = vadd.f32 %v3352_v51, %v1300_v1  ;;  %1827 = vst [vmem:[#allocation12 + $0x48] sm:$0xff] %v1686_v60  ;;  %v1639_v20 = vadd.f32 %v1638_v38, %v3453_v30  ;;  %v1785_v32 = vpop.f32.mrf.mxu0  ;;  %v2314_v7 = vpop.eup %2313 }
 0x2b2   :  { %1828 = vst [vmem:[#allocation12 + $0x50] sm:$0xff] %v1735_v26  ;;  %v1786_v31 = vadd.f32 %v1785_v32, %v3456_v14  ;;  %v1249_v40 = vmul.f32 %v2314_v7, %v1106_v3  ;;  %vm1255_vm12 = vweird.f32 %v2314_v7 }
 0x2b3   :  { %v2192_v21 = vpack.c.bf16 %v1321_v6, %v1320_v41  ;;  %1830 = vst [vmem:[#allocation12 + $0x60] sm:$0xff] %v1639_v20  ;;  %vm1256_vm14 = vmor %vm1254_vm13, %vm1255_vm12 }
 0x2b4   :  { %1833 = vst [vmem:[#allocation12 + $0x78] sm:$0xff] %v1786_v31  ;;  %v1250_v54 = vmul.f32 %v2314_v7, %v1249_v40 }
 0x2b5   :  { %2204 = vst [vmem:[#allocation2 + $0x28] sm:$0xff] %v2192_v21   ;;  %v2124_v37 = vld [vmem:[#allocation2 + $0x20] sm:$0xff] }
 0x2b6   :  { %1655 = vmatmul.bf16.gmra.mxu1 %v2124_v37  ;;  %1704 = vmatmul.bf16.gmra.mxu2 %v2124_v37  ;;  %v1687_v43 = vpop.f32.mrf.mxu2  ;;  %v1251_v0 = vmul.f32 0.5, %v1250_v54 }
 0x2b7   :  { %1753 = vmatmul.bf16.gmra.mxu3 %v2124_v37  ;;  %1802 = vmatmul.bf16.gmra.mxu0 %v2124_v37  ;;  %v1688_v2 = vadd.f32 %v1687_v43, %v3470_v50  ;;  %v1736_v55 = vpop.f32.mrf.mxu3 }
 0x2b8   :  { %v1737_v39 = vadd.f32 %v1736_v55, %v3474_v58  ;;  %v1641_v62 = vpop.f32.mrf.mxu1  ;;  %v1252_v47 = vsub.f32 1.5, %v1251_v0 }
 0x2b9   :  { %1831 = vst [vmem:[#allocation12 + $0x68] sm:$0xff] %v1688_v2  ;;  %v1642_v33 = vadd.f32 %v1641_v62, %v3453_v30  ;;  %v1788_v10 = vpop.f32.mrf.mxu0 }
 0x2ba   :  { %1832 = vst [vmem:[#allocation12 + $0x70] sm:$0xff] %v1737_v39  ;;  %v1789_v57 = vadd.f32 %v1788_v10, %v3456_v14  ;;  %v1253_v12 = vmul.f32 %v2314_v7, %v1252_v47 }
 0x2bb   :  { %1834 = vst [vmem:[#allocation12 + $0x80] sm:$0xff] %v1642_v33 }
 0x2bc   :  { %1837 = vst [vmem:[#allocation12 + $0x98] sm:$0xff] %v1789_v57  ;;  %v2125_v49 = vld [vmem:[#allocation2 + $0x28] sm:$0xff]  ;;  %v1257_v45 = vsel %vm1256_vm14, %v2314_v7, %v1253_v12 }
 0x2bd   :  { %v1282_v36 = vmul.f32 %v1257_v45, %v3400_v11 }
 0x2be   :  { %v1690_v18 = vpop.f32.mrf.mxu2 }
 0x2bf   :  { %v1691_v15 = vadd.f32 %v1690_v18, %v3470_v50  ;;  %v1739_v35 = vpop.f32.mrf.mxu3  ;;  %v1302_v42 = vmul.f32 %v3341_v16, %v1282_v36 }
 0x2c0   :  { %v1740_v48 = vadd.f32 %v1739_v35, %v3474_v58  ;;  %v1643_v13 = vpop.f32.mrf.mxu1 }
 0x2c1   :  { %1835 = vst [vmem:[#allocation12 + $0x88] sm:$0xff] %v1691_v15  ;;  %v1644_v59 = vadd.f32 %v1643_v13, %v3453_v30  ;;  %v1790_v44 = vpop.f32.mrf.mxu0  ;;  %v1322_v60 = vadd.f32 %v3352_v51, %v1302_v42 }
 0x2c2   :  { %1836 = vst [vmem:[#allocation12 + $0x90] sm:$0xff] %v1740_v48  ;;  %v1791_v8 = vadd.f32 %v1790_v44, %v3456_v14 }
 0x2c3   :  { %1838 = vst [vmem:[#allocation12 + $0xa0] sm:$0xff] %v1644_v59 }
 0x2c4   :  { %1841 = vst [vmem:[#allocation12 + $0xb8] sm:$0xff] %v1791_v8 }
 0x2c6   :  { %1660 = vmatmul.bf16.gmra.mxu1 %v2125_v49  ;;  %1709 = vmatmul.bf16.gmra.mxu2 %v2125_v49  ;;  %v1692_v24 = vpop.f32.mrf.mxu2 }
 0x2c7   :  { %1758 = vmatmul.bf16.gmra.mxu3 %v2125_v49  ;;  %1807 = vmatmul.bf16.gmra.mxu0 %v2125_v49  ;;  %v1693_v28 = vadd.f32 %v1692_v24, %v3470_v50  ;;  %v1741_v23 = vpop.f32.mrf.mxu3 }
 0x2c8   :  { %v1742_v5 = vadd.f32 %v1741_v23, %v3474_v58 }
 0x2c9   :  { %1839 = vst [vmem:[#allocation12 + $0xa8] sm:$0xff] %v1693_v28 }
 0x2ca   :  { %1840 = vst [vmem:[#allocation12 + $0xb0] sm:$0xff] %v1742_v5 }
 0x2ec   :  { %v1075_v22 = vpop.xlane.xlu1 %1074 }
 0x2ed   :  { %v1091_v61 = vmul.f32 %v1075_v22, %v3014_v52 }
 0x2ef   :  { %v1107_v19 = vadd.f32 1e-12, %v1091_v61 }
 0x2f1   :  { %2315 = vrsqrt.f32 %v1107_v19  ;;  %vm1264_vm0 = vweird.f32 %v1107_v19 }
 0x2f7   :  { %v2316_v17 = vpop.eup %2315 }
 0x2f8   :  { %v1259_v27 = vmul.f32 %v2316_v17, %v1107_v19  ;;  %vm1265_vm15 = vweird.f32 %v2316_v17 }
 0x2f9   :  { %vm1266_vm1 = vmor %vm1264_vm0, %vm1265_vm15 }
 0x2fa   :  { %v1260_v29 = vmul.f32 %v2316_v17, %v1259_v27 }
 0x2fc   :  { %v1261_v56 = vmul.f32 0.5, %v1260_v29 }
 0x2fe   :  { %v1262_v53 = vsub.f32 1.5, %v1261_v56 }
 0x300   :  { %v1263_v46 = vmul.f32 %v2316_v17, %v1262_v53 }
 0x302   :  { %v1267_v52 = vsel %vm1266_vm1, %v2316_v17, %v1263_v46 }
 0x303   :  { %v1283_v1 = vmul.f32 %v1267_v52, %v3427_v9 }
 0x305   :  { %v1303_v25 = vmul.f32 %v3341_v16, %v1283_v1 }
 0x306   :  { %v1646_v6 = vpop.f32.mrf.mxu1 }
 0x307   :  { %v1323_v34 = vadd.f32 %v3352_v51, %v1303_v25  ;;  %v1647_v41 = vadd.f32 %v1646_v6, %v3453_v30  ;;  %v1793_v26 = vpop.f32.mrf.mxu0 }
 0x308   :  { %v1794_v11 = vadd.f32 %v1793_v26, %v3456_v14 }
 0x309   :  { %v2197_v38 = vpack.c.bf16 %v1323_v34, %v1322_v60  ;;  %1842 = vst [vmem:[#allocation12 + $0xc0] sm:$0xff] %v1647_v41 }
 0x30a   :  { %1845 = vst [vmem:[#allocation12 + $0xd8] sm:$0xff] %v1794_v11 }
 0x30b   :  { %2205 = vst [vmem:[#allocation2 + $0x38] sm:$0xff] %v2197_v38  }
 0x30c   :  { %v1695_v20 = vpop.f32.mrf.mxu2 }
 0x30d   :  { %v1696_v32 = vadd.f32 %v1695_v20, %v3470_v50  ;;  %v1744_v9 = vpop.f32.mrf.mxu3 }
 0x30e   :  { %v1745_v16 = vadd.f32 %v1744_v9, %v3474_v58  ;;  %v1648_v21 = vpop.f32.mrf.mxu1 }
 0x30f   :  { %1843 = vst [vmem:[#allocation12 + $0xc8] sm:$0xff] %v1696_v32  ;;  %v1649_v51 = vadd.f32 %v1648_v21, %v3453_v30  ;;  %v1795_v31 = vpop.f32.mrf.mxu0 }
 0x310   :  { %1844 = vst [vmem:[#allocation12 + $0xd0] sm:$0xff] %v1745_v16  ;;  %v1796_v37 = vadd.f32 %v1795_v31, %v3456_v14 }
 0x311   :  { %1846 = vst [vmem:[#allocation12 + $0xe0] sm:$0xff] %v1649_v51 }
 0x312   :  { %v2126_v43 = vld [vmem:[#allocation2 + $0x38] sm:$0xff]  ;;  %1849 = vst [vmem:[#allocation12 + $0xf8] sm:$0xff] %v1796_v37 }
 0x313   :  { %1665 = vmatmul.bf16.gmra.mxu1 %v2126_v43  ;;  %1714 = vmatmul.bf16.gmra.mxu2 %v2126_v43 }
 0x314   :  { %1763 = vmatmul.bf16.gmra.mxu3 %v2126_v43  ;;  %1812 = vmatmul.bf16.gmra.mxu0 %v2126_v43  ;;  %v1697_v2 = vpop.f32.mrf.mxu2 }
 0x315   :  { %v1698_v55 = vadd.f32 %v1697_v2, %v3470_v50  ;;  %v1746_v39 = vpop.f32.mrf.mxu3 }
 0x316   :  { %v1747_v62 = vadd.f32 %v1746_v39, %v3474_v58 }
 0x317   :  { %1847 = vst [vmem:[#allocation12 + $0xe8] sm:$0xff] %v1698_v55 }
 0x318   :  { %1848 = vst [vmem:[#allocation12 + $0xf0] sm:$0xff] %v1747_v62 }
 0x322   :  { %v1651_v33 = vpop.f32.mrf.mxu1 }
 0x323   :  { %v1652_v10 = vadd.f32 %v1651_v33, %v3453_v30  ;;  %v1798_v57 = vpop.f32.mrf.mxu0 }
 0x324   :  { %v1799_v18 = vadd.f32 %v1798_v57, %v3456_v14 }
 0x325   :  { %1850 = vst [vmem:[#allocation12 + $0x100] sm:$0xff] %v1652_v10 }
 0x326   :  { %1853 = vst [vmem:[#allocation12 + $0x118] sm:$0xff] %v1799_v18 }
 0x328   :  { %v1700_v15 = vpop.f32.mrf.mxu2 }
 0x329   :  { %v1701_v35 = vadd.f32 %v1700_v15, %v3470_v50  ;;  %v1749_v48 = vpop.f32.mrf.mxu3 }
 0x32a   :  { %v1750_v13 = vadd.f32 %v1749_v48, %v3474_v58  ;;  %v1653_v59 = vpop.f32.mrf.mxu1 }
 0x32b   :  { %1851 = vst [vmem:[#allocation12 + $0x108] sm:$0xff] %v1701_v35  ;;  %v1654_v44 = vadd.f32 %v1653_v59, %v3453_v30  ;;  %v1800_v8 = vpop.f32.mrf.mxu0 }
 0x32c   :  { %1852 = vst [vmem:[#allocation12 + $0x110] sm:$0xff] %v1750_v13  ;;  %v1801_v49 = vadd.f32 %v1800_v8, %v3456_v14 }
 0x32d   :  { %1854 = vst [vmem:[#allocation12 + $0x120] sm:$0xff] %v1654_v44 }
 0x32e   :  { %1857 = vst [vmem:[#allocation12 + $0x138] sm:$0xff] %v1801_v49 }
 0x330   :  { %v1702_v24 = vpop.f32.mrf.mxu2 }
 0x331   :  { %v1703_v28 = vadd.f32 %v1702_v24, %v3470_v50  ;;  %v1751_v23 = vpop.f32.mrf.mxu3 }
 0x332   :  { %v1752_v5 = vadd.f32 %v1751_v23, %v3474_v58 }
 0x333   :  { %1855 = vst [vmem:[#allocation12 + $0x128] sm:$0xff] %v1703_v28  ;;  %v1656_v4 = vpop.f32.mrf.mxu1 }
 0x334   :  { %1856 = vst [vmem:[#allocation12 + $0x130] sm:$0xff] %v1752_v5  ;;  %v1657_v63 = vadd.f32 %v1656_v4, %v3453_v30  ;;  %v1803_v3 = vpop.f32.mrf.mxu0 }
 0x335   :  { %v1804_v7 = vadd.f32 %v1803_v3, %v3456_v14 }
 0x336   :  { %1858 = vst [vmem:[#allocation12 + $0x140] sm:$0xff] %v1657_v63 }
 0x337   :  { %1861 = vst [vmem:[#allocation12 + $0x158] sm:$0xff] %v1804_v7 }
 0x339   :  { %v1705_v40 = vpop.f32.mrf.mxu2 }
 0x33a   :  { %v1706_v54 = vadd.f32 %v1705_v40, %v3470_v50  ;;  %v1754_v22 = vpop.f32.mrf.mxu3 }
 0x33b   :  { %v1755_v61 = vadd.f32 %v1754_v22, %v3474_v58  ;;  %v1658_v19 = vpop.f32.mrf.mxu1 }
 0x33c   :  { %1859 = vst [vmem:[#allocation12 + $0x148] sm:$0xff] %v1706_v54  ;;  %v1659_v0 = vadd.f32 %v1658_v19, %v3453_v30  ;;  %v1805_v47 = vpop.f32.mrf.mxu0 }
 0x33d   :  { %1860 = vst [vmem:[#allocation12 + $0x150] sm:$0xff] %v1755_v61  ;;  %v1806_v17 = vadd.f32 %v1805_v47, %v3456_v14 }
 0x33e   :  { %1862 = vst [vmem:[#allocation12 + $0x160] sm:$0xff] %v1659_v0 }
 0x33f   :  { %1865 = vst [vmem:[#allocation12 + $0x178] sm:$0xff] %v1806_v17 }
 0x341   :  { %v1707_v12 = vpop.f32.mrf.mxu2 }
 0x342   :  { %v1708_v27 = vadd.f32 %v1707_v12, %v3470_v50  ;;  %v1756_v29 = vpop.f32.mrf.mxu3 }
 0x343   :  { %v1757_v45 = vadd.f32 %v1756_v29, %v3474_v58  ;;  %v1661_v56 = vpop.f32.mrf.mxu1 }
 0x344   :  { %1863 = vst [vmem:[#allocation12 + $0x168] sm:$0xff] %v1708_v27  ;;  %v1662_v53 = vadd.f32 %v1661_v56, %v3453_v30  ;;  %v1808_v36 = vpop.f32.mrf.mxu0 }
 0x345   :  { %1864 = vst [vmem:[#allocation12 + $0x170] sm:$0xff] %v1757_v45  ;;  %v1809_v46 = vadd.f32 %v1808_v36, %v3456_v14 }
 0x346   :  { %1866 = vst [vmem:[#allocation12 + $0x180] sm:$0xff] %v1662_v53 }
 0x347   :  { %1869 = vst [vmem:[#allocation12 + $0x198] sm:$0xff] %v1809_v46 }
 0x349   :  { %v1710_v52 = vpop.f32.mrf.mxu2 }
 0x34a   :  { %v1711_v42 = vadd.f32 %v1710_v52, %v3470_v50  ;;  %v1759_v1 = vpop.f32.mrf.mxu3 }
 0x34b   :  { %v1760_v25 = vadd.f32 %v1759_v1, %v3474_v58  ;;  %v1663_v60 = vpop.f32.mrf.mxu1 }
 0x34c   :  { %1867 = vst [vmem:[#allocation12 + $0x188] sm:$0xff] %v1711_v42  ;;  %v1664_v34 = vadd.f32 %v1663_v60, %v3453_v30  ;;  %v1810_v6 = vpop.f32.mrf.mxu0 }
 0x34d   :  { %1868 = vst [vmem:[#allocation12 + $0x190] sm:$0xff] %v1760_v25  ;;  %v1811_v41 = vadd.f32 %v1810_v6, %v3456_v14 }
 0x34e   :  { %1870 = vst [vmem:[#allocation12 + $0x1a0] sm:$0xff] %v1664_v34 }
 0x34f   :  { %1873 = vst [vmem:[#allocation12 + $0x1b8] sm:$0xff] %v1811_v41 }
 0x351   :  { %v1712_v26 = vpop.f32.mrf.mxu2 }
 0x352   :  { %v1713_v38 = vadd.f32 %v1712_v26, %v3470_v50  ;;  %v1761_v11 = vpop.f32.mrf.mxu3 }
 0x353   :  { %v1762_v20 = vadd.f32 %v1761_v11, %v3474_v58 }
 0x354   :  { %1871 = vst [vmem:[#allocation12 + $0x1a8] sm:$0xff] %v1713_v38 }
 0x355   :  { %1872 = vst [vmem:[#allocation12 + $0x1b0] sm:$0xff] %v1762_v20 }
 0x390   :  { %v1666_v32 = vpop.f32.mrf.mxu1 }
 0x391   :  { %v1667_v9 = vadd.f32 %v1666_v32, %v3453_v30  ;;  %v1813_v16 = vpop.f32.mrf.mxu0 }
 0x392   :  { %v1814_v21 = vadd.f32 %v1813_v16, %v3456_v14 }
 0x393   :  { %1874 = vst [vmem:[#allocation12 + $0x1c0] sm:$0xff] %v1667_v9 }
 0x394   :  { %1877 = vst [vmem:[#allocation12 + $0x1d8] sm:$0xff] %v1814_v21 }
 0x396   :  { %v1715_v51 = vpop.f32.mrf.mxu2 }
 0x397   :  { %v1716_v31 = vadd.f32 %v1715_v51, %v3470_v50  ;;  %v1764_v37 = vpop.f32.mrf.mxu3 }
 0x398   :  { %v1765_v43 = vadd.f32 %v1764_v37, %v3474_v58  ;;  %v1668_v2 = vpop.f32.mrf.mxu1 }
 0x399   :  { %1875 = vst [vmem:[#allocation12 + $0x1c8] sm:$0xff] %v1716_v31  ;;  %v1669_v55 = vadd.f32 %v1668_v2, %v3453_v30  ;;  %v1815_v39 = vpop.f32.mrf.mxu0 }
 0x39a   :  { %1876 = vst [vmem:[#allocation12 + $0x1d0] sm:$0xff] %v1765_v43  ;;  %v1816_v62 = vadd.f32 %v1815_v39, %v3456_v14 }
 0x39b   :  { %1878 = vst [vmem:[#allocation12 + $0x1e0] sm:$0xff] %v1669_v55 }
 0x39c   :  { %1881 = vst [vmem:[#allocation12 + $0x1f8] sm:$0xff] %v1816_v62 }
 0x39e   :  { %v1717_v33 = vpop.f32.mrf.mxu2 }
 0x39f   :  { %v1718_v10 = vadd.f32 %v1717_v33, %v3470_v50  ;;  %v1766_v57 = vpop.f32.mrf.mxu3 }
 0x3a0   :  { %v1767_v30 = vadd.f32 %v1766_v57, %v3474_v58 }
 0x3a1   :  { %1879 = vst [vmem:[#allocation12 + $0x1e8] sm:$0xff] %v1718_v10 }
 0x3a2   :  { %1880 = vst [vmem:[#allocation12 + $0x1f0] sm:$0xff] %v1767_v30 }
 0x3a3   :  { %1894 = dma.vmem_to_hbm [thread:$0]  %s1887_s9, 8192, %s1889_s12, [#allocation5], %s2484_s13, %s2484_s13, %s2485_s14  }
 0x3a4   :  { %2468 = dma.done.wait [#allocation5], 8192  }
 0x3a5   :  { %2469 = vsyncadd [#allocation5], 4294959104 }
 0x3a6   :  { %1899 = vsyncpa [#allocation4], 1 }
 0x3a7   :  { %1900 = vsyncpa [#allocation7], 1 }
 0x3a8   :  { %1901 = vsyncpa [#allocation10], 1 }
 0x3a9   :  { %1902 = vsyncpa [#allocation5], 1 }

</bundles_post_ra>
